<compile_context>
chip_gen: v6e
topology: v6e:2x2x1
jax: 0.10.0
libtpu: 0.0.40
codegen_flags: <defaults>
</compile_context>

<pallas_src>
import functools

import jax
import jax.numpy as jnp
from jax.experimental import pallas as pl
from jax.experimental.pallas import tpu as pltpu

# ---------------- config (matches Cross_Attention_Block defaults) -------------------
DIM = 64
NUM_HEADS = 8
HEAD_DIM = DIM // NUM_HEADS
MLP_RATIO = 4.0
HIDDEN = int(DIM * MLP_RATIO)
SCALE = HEAD_DIM ** (-0.5)
LN_EPS = 1e-5


def _layernorm(x, g, b):
    # PyTorch nn.LayerNorm semantics: biased variance over last dim, eps inside rsqrt.
    mu = jnp.mean(x, axis=-1, keepdims=True)
    var = jnp.mean((x - mu) ** 2, axis=-1, keepdims=True)
    return (x - mu) * jax.lax.rsqrt(var + LN_EPS) * g + b


def _gelu_exact(x):
    # nn.GELU default = exact erf formulation.
    return 0.5 * x * (1.0 + jax.lax.erf(x * (1.0 / jnp.sqrt(2.0).astype(x.dtype))))


def cross_attention_block_kernel(
    x1_ref, x2_ref,
    n1g_ref, n1b_ref,            # norm1 gamma/beta        (1, D)
    wq_ref, wkv_ref,             # q weight (D, D); fused k|v weight (D, 2D)
    wp_ref, bp_ref,              # attn proj weight/bias   (D, D), (1, D)
    n2g_ref, n2b_ref,            # norm2 gamma/beta        (1, D)
    w1_ref, bf1_ref,             # mlp fc1 weight/bias     (D, H), (1, H)
    gm_ref, bm_ref,              # mlp hidden LayerNorm    (1, H)
    w2_ref, bf2_ref,             # mlp fc2 weight/bias     (H, D), (1, D)
    y_ref,                       # output                  (Bt, N, D)
):
    Bt, N, D = x1_ref.shape
    M = Bt * N

    # Flatten (Bt, N, D) -> (Bt*N, D): exact for all per-row ops, fills MXU/VPU rows.
    x1 = x1_ref[...].reshape(M, D)
    x2 = x2_ref[...].reshape(M, D)

    g1 = n1g_ref[...]
    b1 = n1b_ref[...]

    # ---- pre-norm (norm1 applied to both streams, shared params) ----
    x1n = _layernorm(x1, g1, b1)
    x2n = _layernorm(x2, g1, b1)

    # ---- cross attention: q from x1, fused k|v from x2 (qk_norm=False -> Identity) ----
    q = jnp.dot(x1n, wq_ref[...], preferred_element_type=jnp.float32)    # (M, D)
    kv = jnp.dot(x2n, wkv_ref[...], preferred_element_type=jnp.float32)  # (M, 2D)
    k = kv[:, :D]
    v = kv[:, D:]
    wp = wp_ref[...]

    # -- score blocks for every (batch, head); softmax vectorized over one stacked tile --
    score_blocks = []
    for b in range(Bt):
        rows = slice(b * N, (b + 1) * N)
        qb = q[rows, :]
        kbT = k[rows, :].T                          # one transpose per batch (not per head)
        for h in range(NUM_HEADS):
            lo = h * HEAD_DIM
            score_blocks.append(
                jnp.dot(qb[:, lo:lo + HEAD_DIM], kbT[lo:lo + HEAD_DIM, :],
                        preferred_element_type=jnp.float32))             # (N, N)
    S = jnp.concatenate(score_blocks, axis=0) * SCALE                    # (Bt*H*N, N), sublane concat
    S = S - jnp.max(S, axis=-1, keepdims=True)
    P = jnp.exp(S)
    P = P * pl.reciprocal(jnp.sum(P, axis=-1, keepdims=True), approx=True)

    # -- P@V and output projection, accumulated per head through the MXU (no lane concat) --
    out_rows = []
    idx = 0
    for b in range(Bt):
        rows = slice(b * N, (b + 1) * N)
        vb = v[rows, :]
        acc = jnp.zeros((N, D), jnp.float32)
        for h in range(NUM_HEADS):
            lo = h * HEAD_DIM
            ph = P[idx * N:(idx + 1) * N, :]                             # (N, N) sublane slice
            oh = jnp.dot(ph, vb[:, lo:lo + HEAD_DIM],
                         preferred_element_type=jnp.float32)             # (N, hd)
            acc = acc + jnp.dot(oh, wp[lo:lo + HEAD_DIM, :],
                                preferred_element_type=jnp.float32)      # (N, D)
            idx += 1
        out_rows.append(acc)
    attn_out = jnp.concatenate(out_rows, axis=0) + bp_ref[...]           # (M, D), sublane concat

    # ---- residual 1 ----
    x = x1 + attn_out

    # ---- MLP branch: norm2 -> fc1 -> GELU -> LayerNorm(hidden) -> fc2 ----
    xn = _layernorm(x, n2g_ref[...], n2b_ref[...])
    hdn = jnp.dot(xn, w1_ref[...], preferred_element_type=jnp.float32) + bf1_ref[...]
    hdn = _gelu_exact(hdn)
    hdn = _layernorm(hdn, gm_ref[...], bm_ref[...])
    mlp_out = jnp.dot(hdn, w2_ref[...], preferred_element_type=jnp.float32) + bf2_ref[...]

    # ---- residual 2 ----
    y_ref[...] = (x + mlp_out).reshape(Bt, N, D)


def _pick_bt(B, N, target_rows=128, max_rows=1024):
    """Largest useful batch tile Bt that divides B (so no tail masking is needed).

    Prefers the smallest Bt with Bt*N >= target_rows that still leaves >= 2 grid steps
    (keeps both v7x TensorCores busy); otherwise fills rows as much as possible
    (fewer grid steps = less per-step overhead, best on v5e/v6e)."""
    divisors = [d for d in range(1, B + 1) if B % d == 0]
    good = [d for d in divisors if target_rows <= d * N <= max_rows and B // d >= 2]
    if good:
        return min(good)
    good = [d for d in divisors if target_rows <= d * N <= max_rows]
    if good:
        return min(good)
    good = [d for d in divisors if d * N <= max_rows]
    return max(good) if good else 1


def init_params(key, dim=DIM, hidden=HIDDEN):
    ks = jax.random.split(key, 8)
    s = 0.02
    return dict(
        norm1_g=jnp.ones((1, dim), jnp.float32),
        norm1_b=jnp.zeros((1, dim), jnp.float32),
        # Linear weights stored pre-transposed: (in, out) == W_pytorch.T
        wq=jax.random.normal(ks[0], (dim, dim), jnp.float32) * s,
        wk=jax.random.normal(ks[1], (dim, dim), jnp.float32) * s,
        wv=jax.random.normal(ks[2], (dim, dim), jnp.float32) * s,
        wp=jax.random.normal(ks[3], (dim, dim), jnp.float32) * s,
        bp=jax.random.normal(ks[4], (1, dim), jnp.float32) * s,
        norm2_g=jnp.ones((1, dim), jnp.float32),
        norm2_b=jnp.zeros((1, dim), jnp.float32),
        w_fc1=jax.random.normal(ks[5], (dim, hidden), jnp.float32) * s,
        b_fc1=jnp.zeros((1, hidden), jnp.float32),
        mlp_norm_g=jnp.ones((1, hidden), jnp.float32),
        mlp_norm_b=jnp.zeros((1, hidden), jnp.float32),
        w_fc2=jax.random.normal(ks[6], (hidden, dim), jnp.float32) * s,
        b_fc2=jnp.zeros((1, dim), jnp.float32),
    )


@jax.jit
def cross_attention_block(x1, x2, params):
    B, N, D = x1.shape
    H = params["w_fc1"].shape[1]
    Bt = _pick_bt(B, N)
    grid = (B // Bt,)

    # Fuse k|v weights -> one (D, 2D) matmul inside the kernel.
    wkv = jnp.concatenate([params["wk"], params["wv"]], axis=1)

    act_spec = pl.BlockSpec((Bt, N, D), lambda b: (b, 0, 0))
    full2d = lambda shape: pl.BlockSpec(shape, lambda b: (0, 0))

    in_specs = [
        act_spec, act_spec,                               # x1, x2
        full2d((1, D)), full2d((1, D)),                   # norm1 g/b
        full2d((D, D)), full2d((D, 2 * D)),               # wq, wkv
        full2d((D, D)), full2d((1, D)),                   # wp, bp
        full2d((1, D)), full2d((1, D)),                   # norm2 g/b
        full2d((D, H)), full2d((1, H)),                   # fc1 w/b
        full2d((1, H)), full2d((1, H)),                   # mlp hidden LN g/b
        full2d((H, D)), full2d((1, D)),                   # fc2 w/b
    ]

    # Advisory cost hint for XLA's scheduler around this small custom call.
    flops = 2 * B * N * (4 * D * D + 2 * N * D + 2 * D * H)
    transcendentals = B * N * (NUM_HEADS * N + H)
    bytes_accessed = 4 * (3 * B * N * D + 4 * D * D + 2 * D * H + 2 * H + 6 * D)
    cost = pl.CostEstimate(flops=flops, transcendentals=transcendentals,
                           bytes_accessed=bytes_accessed)

    y = pl.pallas_call(
        cross_attention_block_kernel,
        out_shape=jax.ShapeDtypeStruct((B, N, D), jnp.float32),
        grid_spec=pltpu.PrefetchScalarGridSpec(
            num_scalar_prefetch=0,
            grid=grid,
            in_specs=in_specs,
            out_specs=act_spec,
        ),
        compiler_params=pltpu.CompilerParams(
            dimension_semantics=("parallel",)),
        cost_estimate=cost,
    )(
        x1, x2,
        params["norm1_g"], params["norm1_b"],
        params["wq"], wkv,
        params["wp"], params["bp"],
        params["norm2_g"], params["norm2_b"],
        params["w_fc1"], params["b_fc1"],
        params["mlp_norm_g"], params["mlp_norm_b"],
        params["w_fc2"], params["b_fc2"],
    )
    # fix_context=True  ->  return (x, x2)
    return y, x2


# ---------------- pure-JAX reference (for correctness check) -------------------------
def _reference(x1, x2, p):
    def ln(x, g, b):
        mu = jnp.mean(x, -1, keepdims=True)
        var = jnp.mean((x - mu) ** 2, -1, keepdims=True)
        return (x - mu) * jax.lax.rsqrt(var + LN_EPS) * g + b

    B, N, D = x1.shape
    x1n = ln(x1, p["norm1_g"], p["norm1_b"])
    x2n = ln(x2, p["norm1_g"], p["norm1_b"])
    q = (x1n @ p["wq"]).reshape(B, N, NUM_HEADS, HEAD_DIM).transpose(0, 2, 1, 3)
    k = (x2n @ p["wk"]).reshape(B, N, NUM_HEADS, HEAD_DIM).transpose(0, 2, 1, 3)
    v = (x2n @ p["wv"]).reshape(B, N, NUM_HEADS, HEAD_DIM).transpose(0, 2, 1, 3)
    attn = jax.nn.softmax(jnp.einsum("bhnd,bhmd->bhnm", q, k) * SCALE, axis=-1)
    o = jnp.einsum("bhnm,bhmd->bhnd", attn, v).transpose(0, 2, 1, 3).reshape(B, N, D)
    o = o @ p["wp"] + p["bp"]
    x = x1 + o
    xn = ln(x, p["norm2_g"], p["norm2_b"])
    h = xn @ p["w_fc1"] + p["b_fc1"]
    h = jax.nn.gelu(h, approximate=False)
    h = ln(h, p["mlp_norm_g"], p["mlp_norm_b"])
    return x + (h @ p["w_fc2"] + p["b_fc2"])


if __name__ == "__main__":
    key = jax.random.PRNGKey(0)
    k1, k2, kp = jax.random.split(key, 3)

    B, N, D = 2, 8, DIM
    x1 = jax.random.normal(k1, (B, N, D), jnp.float32)
    x2 = jax.random.normal(k2, (B, N, D), jnp.float32)
    params = init_params(kp)

    y, ctx = cross_attention_block(x1, x2, params)
    jax.block_until_ready(y)
    jax.block_until_ready(ctx)

    ref = _reference(x1, x2, params)
    # slightly loosened tolerance: softmax normalization uses the EUP approximate reciprocal
    assert jnp.allclose(y, ref, rtol=2e-3, atol=2e-3), "mismatch vs JAX reference"
    assert jnp.array_equal(ctx, x2)

    print("KERNEL_OK")
</pallas_src>

<mosaic_0001>
module attributes {stable_mosaic.version = 11 : i64} {
  func.func @cross_attention_block_kernel(%arg0: i32, %arg1: memref<2x8x64xf32, #tpu.memory_space<vmem>>, %arg2: memref<2x8x64xf32, #tpu.memory_space<vmem>>, %arg3: memref<1x64xf32, #tpu.memory_space<vmem>>, %arg4: memref<1x64xf32, #tpu.memory_space<vmem>>, %arg5: memref<64x64xf32, #tpu.memory_space<vmem>>, %arg6: memref<64x128xf32, #tpu.memory_space<vmem>>, %arg7: memref<64x64xf32, #tpu.memory_space<vmem>>, %arg8: memref<1x64xf32, #tpu.memory_space<vmem>>, %arg9: memref<1x64xf32, #tpu.memory_space<vmem>>, %arg10: memref<1x64xf32, #tpu.memory_space<vmem>>, %arg11: memref<64x256xf32, #tpu.memory_space<vmem>>, %arg12: memref<1x256xf32, #tpu.memory_space<vmem>>, %arg13: memref<1x256xf32, #tpu.memory_space<vmem>>, %arg14: memref<1x256xf32, #tpu.memory_space<vmem>>, %arg15: memref<256x64xf32, #tpu.memory_space<vmem>>, %arg16: memref<1x64xf32, #tpu.memory_space<vmem>>, %arg17: memref<2x8x64xf32, #tpu.memory_space<vmem>>) attributes {dimension_semantics = [#tpu.dimension_semantics<parallel>], iteration_bounds = array<i64: 1>, scalar_prefetch = 0 : i64, scratch_operands = 0 : i64, tpu.core_type = #tpu.core_type<tc>, window_params = [{transform_indices = @transform_0, window_bounds = array<i64: 2, 8, 64>}, {transform_indices = @transform_1, window_bounds = array<i64: 2, 8, 64>}, {pipeline_mode = #tpu.pipeline_mode<synchronous>, transform_indices = @transform_2, window_bounds = array<i64: 1, 64>}, {pipeline_mode = #tpu.pipeline_mode<synchronous>, transform_indices = @transform_3, window_bounds = array<i64: 1, 64>}, {pipeline_mode = #tpu.pipeline_mode<synchronous>, transform_indices = @transform_4, window_bounds = array<i64: 64, 64>}, {pipeline_mode = #tpu.pipeline_mode<synchronous>, transform_indices = @transform_5, window_bounds = array<i64: 64, 128>}, {pipeline_mode = #tpu.pipeline_mode<synchronous>, transform_indices = @transform_6, window_bounds = array<i64: 64, 64>}, {pipeline_mode = #tpu.pipeline_mode<synchronous>, transform_indices = @transform_7, window_bounds = array<i64: 1, 64>}, {pipeline_mode = #tpu.pipeline_mode<synchronous>, transform_indices = @transform_8, window_bounds = array<i64: 1, 64>}, {pipeline_mode = #tpu.pipeline_mode<synchronous>, transform_indices = @transform_9, window_bounds = array<i64: 1, 64>}, {pipeline_mode = #tpu.pipeline_mode<synchronous>, transform_indices = @transform_10, window_bounds = array<i64: 64, 256>}, {pipeline_mode = #tpu.pipeline_mode<synchronous>, transform_indices = @transform_11, window_bounds = array<i64: 1, 256>}, {pipeline_mode = #tpu.pipeline_mode<synchronous>, transform_indices = @transform_12, window_bounds = array<i64: 1, 256>}, {pipeline_mode = #tpu.pipeline_mode<synchronous>, transform_indices = @transform_13, window_bounds = array<i64: 1, 256>}, {pipeline_mode = #tpu.pipeline_mode<synchronous>, transform_indices = @transform_14, window_bounds = array<i64: 256, 64>}, {pipeline_mode = #tpu.pipeline_mode<synchronous>, transform_indices = @transform_15, window_bounds = array<i64: 1, 64>}, {transform_indices = @transform_16, window_bounds = array<i64: 2, 8, 64>}]} {
    %c0 = arith.constant 0 : index
    %c0_0 = arith.constant 0 : index
    %c0_1 = arith.constant 0 : index
    %0 = vector.load %arg1[%c0, %c0_0, %c0_1] : memref<2x8x64xf32, #tpu.memory_space<vmem>>, vector<2x8x64xf32>
    %1 = vector.shape_cast %0 : vector<2x8x64xf32> to vector<16x64xf32>
    %c0_2 = arith.constant 0 : index
    %c0_3 = arith.constant 0 : index
    %c0_4 = arith.constant 0 : index
    %2 = vector.load %arg2[%c0_2, %c0_3, %c0_4] : memref<2x8x64xf32, #tpu.memory_space<vmem>>, vector<2x8x64xf32>
    %3 = vector.shape_cast %2 : vector<2x8x64xf32> to vector<16x64xf32>
    %c0_5 = arith.constant 0 : index
    %c0_6 = arith.constant 0 : index
    %4 = vector.load %arg3[%c0_5, %c0_6] : memref<1x64xf32, #tpu.memory_space<vmem>>, vector<1x64xf32>
    %c0_7 = arith.constant 0 : index
    %c0_8 = arith.constant 0 : index
    %5 = vector.load %arg4[%c0_7, %c0_8] : memref<1x64xf32, #tpu.memory_space<vmem>>, vector<1x64xf32>
    %cst = arith.constant dense<0.000000e+00> : vector<16xf32>
    %6 = vector.multi_reduction <add>, %1, %cst [1] : vector<16x64xf32> to vector<16xf32>
    %7 = vector.shape_cast %6 : vector<16xf32> to vector<16x1xf32>
    %cst_9 = arith.constant 6.400000e+01 : f32
    %8 = vector.broadcast %cst_9 : f32 to vector<16x1xf32>
    %9 = arith.divf %7, %8 : vector<16x1xf32>
    %10 = vector.broadcast %9 : vector<16x1xf32> to vector<16x64xf32>
    %11 = arith.subf %1, %10 : vector<16x64xf32>
    %12 = arith.mulf %11, %11 : vector<16x64xf32>
    %cst_10 = arith.constant dense<0.000000e+00> : vector<16xf32>
    %13 = vector.multi_reduction <add>, %12, %cst_10 [1] : vector<16x64xf32> to vector<16xf32>
    %14 = vector.shape_cast %13 : vector<16xf32> to vector<16x1xf32>
    %cst_11 = arith.constant 6.400000e+01 : f32
    %15 = vector.broadcast %cst_11 : f32 to vector<16x1xf32>
    %16 = arith.divf %14, %15 : vector<16x1xf32>
    %17 = vector.broadcast %9 : vector<16x1xf32> to vector<16x64xf32>
    %18 = arith.subf %1, %17 : vector<16x64xf32>
    %cst_12 = arith.constant 9.99999974E-6 : f32
    %19 = vector.broadcast %cst_12 : f32 to vector<16x1xf32>
    %20 = arith.addf %16, %19 : vector<16x1xf32>
    %21 = math.rsqrt %20 : vector<16x1xf32>
    %22 = vector.broadcast %21 : vector<16x1xf32> to vector<16x64xf32>
    %23 = arith.mulf %18, %22 : vector<16x64xf32>
    %24 = vector.broadcast %4 : vector<1x64xf32> to vector<16x64xf32>
    %25 = arith.mulf %23, %24 : vector<16x64xf32>
    %26 = vector.broadcast %5 : vector<1x64xf32> to vector<16x64xf32>
    %27 = arith.addf %25, %26 : vector<16x64xf32>
    %cst_13 = arith.constant dense<0.000000e+00> : vector<16xf32>
    %28 = vector.multi_reduction <add>, %3, %cst_13 [1] : vector<16x64xf32> to vector<16xf32>
    %29 = vector.shape_cast %28 : vector<16xf32> to vector<16x1xf32>
    %cst_14 = arith.constant 6.400000e+01 : f32
    %30 = vector.broadcast %cst_14 : f32 to vector<16x1xf32>
    %31 = arith.divf %29, %30 : vector<16x1xf32>
    %32 = vector.broadcast %31 : vector<16x1xf32> to vector<16x64xf32>
    %33 = arith.subf %3, %32 : vector<16x64xf32>
    %34 = arith.mulf %33, %33 : vector<16x64xf32>
    %cst_15 = arith.constant dense<0.000000e+00> : vector<16xf32>
    %35 = vector.multi_reduction <add>, %34, %cst_15 [1] : vector<16x64xf32> to vector<16xf32>
    %36 = vector.shape_cast %35 : vector<16xf32> to vector<16x1xf32>
    %cst_16 = arith.constant 6.400000e+01 : f32
    %37 = vector.broadcast %cst_16 : f32 to vector<16x1xf32>
    %38 = arith.divf %36, %37 : vector<16x1xf32>
    %39 = vector.broadcast %31 : vector<16x1xf32> to vector<16x64xf32>
    %40 = arith.subf %3, %39 : vector<16x64xf32>
    %cst_17 = arith.constant 9.99999974E-6 : f32
    %41 = vector.broadcast %cst_17 : f32 to vector<16x1xf32>
    %42 = arith.addf %38, %41 : vector<16x1xf32>
    %43 = math.rsqrt %42 : vector<16x1xf32>
    %44 = vector.broadcast %43 : vector<16x1xf32> to vector<16x64xf32>
    %45 = arith.mulf %40, %44 : vector<16x64xf32>
    %46 = vector.broadcast %4 : vector<1x64xf32> to vector<16x64xf32>
    %47 = arith.mulf %45, %46 : vector<16x64xf32>
    %48 = vector.broadcast %5 : vector<1x64xf32> to vector<16x64xf32>
    %49 = arith.addf %47, %48 : vector<16x64xf32>
    %c0_18 = arith.constant 0 : index
    %c0_19 = arith.constant 0 : index
    %50 = vector.load %arg5[%c0_18, %c0_19] : memref<64x64xf32, #tpu.memory_space<vmem>>, vector<64x64xf32>
    %cst_20 = arith.constant dense<0.000000e+00> : vector<16x64xf32>
    %51 = tpu.matmul %27, %50, %cst_20 {dimension_numbers = #tpu.dot_dimension_numbers<[1], [0], [0], [1], [0, 0, 1, 1], [], []>} : vector<16x64xf32>, vector<64x64xf32>, vector<16x64xf32> -> vector<16x64xf32>
    %c0_21 = arith.constant 0 : index
    %c0_22 = arith.constant 0 : index
    %52 = vector.load %arg6[%c0_21, %c0_22] : memref<64x128xf32, #tpu.memory_space<vmem>>, vector<64x128xf32>
    %cst_23 = arith.constant dense<0.000000e+00> : vector<16x128xf32>
    %53 = tpu.matmul %49, %52, %cst_23 {dimension_numbers = #tpu.dot_dimension_numbers<[1], [0], [0], [1], [0, 0, 1, 1], [], []>} : vector<16x64xf32>, vector<64x128xf32>, vector<16x128xf32> -> vector<16x128xf32>
    %54 = vector.extract_strided_slice %53 {offsets = [0, 0], sizes = [16, 64], strides = [1, 1]} : vector<16x128xf32> to vector<16x64xf32>
    %55 = vector.extract_strided_slice %53 {offsets = [0, 64], sizes = [16, 64], strides = [1, 1]} : vector<16x128xf32> to vector<16x64xf32>
    %c0_24 = arith.constant 0 : index
    %c0_25 = arith.constant 0 : index
    %56 = vector.load %arg7[%c0_24, %c0_25] : memref<64x64xf32, #tpu.memory_space<vmem>>, vector<64x64xf32>
    %57 = vector.extract_strided_slice %51 {offsets = [0, 0], sizes = [8, 64], strides = [1, 1]} : vector<16x64xf32> to vector<8x64xf32>
    %58 = vector.extract_strided_slice %54 {offsets = [0, 0], sizes = [8, 64], strides = [1, 1]} : vector<16x64xf32> to vector<8x64xf32>
    %59 = tpu.transpose %58, [1, 0] : vector<8x64xf32> -> vector<64x8xf32>
    %60 = vector.extract_strided_slice %57 {offsets = [0, 0], sizes = [8, 8], strides = [1, 1]} : vector<8x64xf32> to vector<8x8xf32>
    %61 = vector.extract_strided_slice %59 {offsets = [0, 0], sizes = [8, 8], strides = [1, 1]} : vector<64x8xf32> to vector<8x8xf32>
    %cst_26 = arith.constant dense<0.000000e+00> : vector<8x8xf32>
    %62 = tpu.matmul %60, %61, %cst_26 {dimension_numbers = #tpu.dot_dimension_numbers<[1], [0], [0], [1], [0, 0, 1, 1], [], []>} : vector<8x8xf32>, vector<8x8xf32>, vector<8x8xf32> -> vector<8x8xf32>
    %63 = vector.extract_strided_slice %57 {offsets = [0, 8], sizes = [8, 8], strides = [1, 1]} : vector<8x64xf32> to vector<8x8xf32>
    %64 = vector.extract_strided_slice %59 {offsets = [8, 0], sizes = [8, 8], strides = [1, 1]} : vector<64x8xf32> to vector<8x8xf32>
    %cst_27 = arith.constant dense<0.000000e+00> : vector<8x8xf32>
    %65 = tpu.matmul %63, %64, %cst_27 {dimension_numbers = #tpu.dot_dimension_numbers<[1], [0], [0], [1], [0, 0, 1, 1], [], []>} : vector<8x8xf32>, vector<8x8xf32>, vector<8x8xf32> -> vector<8x8xf32>
    %66 = vector.extract_strided_slice %57 {offsets = [0, 16], sizes = [8, 8], strides = [1, 1]} : vector<8x64xf32> to vector<8x8xf32>
    %67 = vector.extract_strided_slice %59 {offsets = [16, 0], sizes = [8, 8], strides = [1, 1]} : vector<64x8xf32> to vector<8x8xf32>
    %cst_28 = arith.constant dense<0.000000e+00> : vector<8x8xf32>
    %68 = tpu.matmul %66, %67, %cst_28 {dimension_numbers = #tpu.dot_dimension_numbers<[1], [0], [0], [1], [0, 0, 1, 1], [], []>} : vector<8x8xf32>, vector<8x8xf32>, vector<8x8xf32> -> vector<8x8xf32>
    %69 = vector.extract_strided_slice %57 {offsets = [0, 24], sizes = [8, 8], strides = [1, 1]} : vector<8x64xf32> to vector<8x8xf32>
    %70 = vector.extract_strided_slice %59 {offsets = [24, 0], sizes = [8, 8], strides = [1, 1]} : vector<64x8xf32> to vector<8x8xf32>
    %cst_29 = arith.constant dense<0.000000e+00> : vector<8x8xf32>
    %71 = tpu.matmul %69, %70, %cst_29 {dimension_numbers = #tpu.dot_dimension_numbers<[1], [0], [0], [1], [0, 0, 1, 1], [], []>} : vector<8x8xf32>, vector<8x8xf32>, vector<8x8xf32> -> vector<8x8xf32>
    %72 = vector.extract_strided_slice %57 {offsets = [0, 32], sizes = [8, 8], strides = [1, 1]} : vector<8x64xf32> to vector<8x8xf32>
    %73 = vector.extract_strided_slice %59 {offsets = [32, 0], sizes = [8, 8], strides = [1, 1]} : vector<64x8xf32> to vector<8x8xf32>
    %cst_30 = arith.constant dense<0.000000e+00> : vector<8x8xf32>
    %74 = tpu.matmul %72, %73, %cst_30 {dimension_numbers = #tpu.dot_dimension_numbers<[1], [0], [0], [1], [0, 0, 1, 1], [], []>} : vector<8x8xf32>, vector<8x8xf32>, vector<8x8xf32> -> vector<8x8xf32>
    %75 = vector.extract_strided_slice %57 {offsets = [0, 40], sizes = [8, 8], strides = [1, 1]} : vector<8x64xf32> to vector<8x8xf32>
    %76 = vector.extract_strided_slice %59 {offsets = [40, 0], sizes = [8, 8], strides = [1, 1]} : vector<64x8xf32> to vector<8x8xf32>
    %cst_31 = arith.constant dense<0.000000e+00> : vector<8x8xf32>
    %77 = tpu.matmul %75, %76, %cst_31 {dimension_numbers = #tpu.dot_dimension_numbers<[1], [0], [0], [1], [0, 0, 1, 1], [], []>} : vector<8x8xf32>, vector<8x8xf32>, vector<8x8xf32> -> vector<8x8xf32>
    %78 = vector.extract_strided_slice %57 {offsets = [0, 48], sizes = [8, 8], strides = [1, 1]} : vector<8x64xf32> to vector<8x8xf32>
    %79 = vector.extract_strided_slice %59 {offsets = [48, 0], sizes = [8, 8], strides = [1, 1]} : vector<64x8xf32> to vector<8x8xf32>
    %cst_32 = arith.constant dense<0.000000e+00> : vector<8x8xf32>
    %80 = tpu.matmul %78, %79, %cst_32 {dimension_numbers = #tpu.dot_dimension_numbers<[1], [0], [0], [1], [0, 0, 1, 1], [], []>} : vector<8x8xf32>, vector<8x8xf32>, vector<8x8xf32> -> vector<8x8xf32>
    %81 = vector.extract_strided_slice %57 {offsets = [0, 56], sizes = [8, 8], strides = [1, 1]} : vector<8x64xf32> to vector<8x8xf32>
    %82 = vector.extract_strided_slice %59 {offsets = [56, 0], sizes = [8, 8], strides = [1, 1]} : vector<64x8xf32> to vector<8x8xf32>
    %cst_33 = arith.constant dense<0.000000e+00> : vector<8x8xf32>
    %83 = tpu.matmul %81, %82, %cst_33 {dimension_numbers = #tpu.dot_dimension_numbers<[1], [0], [0], [1], [0, 0, 1, 1], [], []>} : vector<8x8xf32>, vector<8x8xf32>, vector<8x8xf32> -> vector<8x8xf32>
    %84 = vector.extract_strided_slice %51 {offsets = [8, 0], sizes = [8, 64], strides = [1, 1]} : vector<16x64xf32> to vector<8x64xf32>
    %85 = vector.extract_strided_slice %54 {offsets = [8, 0], sizes = [8, 64], strides = [1, 1]} : vector<16x64xf32> to vector<8x64xf32>
    %86 = tpu.transpose %85, [1, 0] : vector<8x64xf32> -> vector<64x8xf32>
    %87 = vector.extract_strided_slice %84 {offsets = [0, 0], sizes = [8, 8], strides = [1, 1]} : vector<8x64xf32> to vector<8x8xf32>
    %88 = vector.extract_strided_slice %86 {offsets = [0, 0], sizes = [8, 8], strides = [1, 1]} : vector<64x8xf32> to vector<8x8xf32>
    %cst_34 = arith.constant dense<0.000000e+00> : vector<8x8xf32>
    %89 = tpu.matmul %87, %88, %cst_34 {dimension_numbers = #tpu.dot_dimension_numbers<[1], [0], [0], [1], [0, 0, 1, 1], [], []>} : vector<8x8xf32>, vector<8x8xf32>, vector<8x8xf32> -> vector<8x8xf32>
    %90 = vector.extract_strided_slice %84 {offsets = [0, 8], sizes = [8, 8], strides = [1, 1]} : vector<8x64xf32> to vector<8x8xf32>
    %91 = vector.extract_strided_slice %86 {offsets = [8, 0], sizes = [8, 8], strides = [1, 1]} : vector<64x8xf32> to vector<8x8xf32>
    %cst_35 = arith.constant dense<0.000000e+00> : vector<8x8xf32>
    %92 = tpu.matmul %90, %91, %cst_35 {dimension_numbers = #tpu.dot_dimension_numbers<[1], [0], [0], [1], [0, 0, 1, 1], [], []>} : vector<8x8xf32>, vector<8x8xf32>, vector<8x8xf32> -> vector<8x8xf32>
    %93 = vector.extract_strided_slice %84 {offsets = [0, 16], sizes = [8, 8], strides = [1, 1]} : vector<8x64xf32> to vector<8x8xf32>
    %94 = vector.extract_strided_slice %86 {offsets = [16, 0], sizes = [8, 8], strides = [1, 1]} : vector<64x8xf32> to vector<8x8xf32>
    %cst_36 = arith.constant dense<0.000000e+00> : vector<8x8xf32>
    %95 = tpu.matmul %93, %94, %cst_36 {dimension_numbers = #tpu.dot_dimension_numbers<[1], [0], [0], [1], [0, 0, 1, 1], [], []>} : vector<8x8xf32>, vector<8x8xf32>, vector<8x8xf32> -> vector<8x8xf32>
    %96 = vector.extract_strided_slice %84 {offsets = [0, 24], sizes = [8, 8], strides = [1, 1]} : vector<8x64xf32> to vector<8x8xf32>
    %97 = vector.extract_strided_slice %86 {offsets = [24, 0], sizes = [8, 8], strides = [1, 1]} : vector<64x8xf32> to vector<8x8xf32>
    %cst_37 = arith.constant dense<0.000000e+00> : vector<8x8xf32>
    %98 = tpu.matmul %96, %97, %cst_37 {dimension_numbers = #tpu.dot_dimension_numbers<[1], [0], [0], [1], [0, 0, 1, 1], [], []>} : vector<8x8xf32>, vector<8x8xf32>, vector<8x8xf32> -> vector<8x8xf32>
    %99 = vector.extract_strided_slice %84 {offsets = [0, 32], sizes = [8, 8], strides = [1, 1]} : vector<8x64xf32> to vector<8x8xf32>
    %100 = vector.extract_strided_slice %86 {offsets = [32, 0], sizes = [8, 8], strides = [1, 1]} : vector<64x8xf32> to vector<8x8xf32>
    %cst_38 = arith.constant dense<0.000000e+00> : vector<8x8xf32>
    %101 = tpu.matmul %99, %100, %cst_38 {dimension_numbers = #tpu.dot_dimension_numbers<[1], [0], [0], [1], [0, 0, 1, 1], [], []>} : vector<8x8xf32>, vector<8x8xf32>, vector<8x8xf32> -> vector<8x8xf32>
    %102 = vector.extract_strided_slice %84 {offsets = [0, 40], sizes = [8, 8], strides = [1, 1]} : vector<8x64xf32> to vector<8x8xf32>
    %103 = vector.extract_strided_slice %86 {offsets = [40, 0], sizes = [8, 8], strides = [1, 1]} : vector<64x8xf32> to vector<8x8xf32>
    %cst_39 = arith.constant dense<0.000000e+00> : vector<8x8xf32>
    %104 = tpu.matmul %102, %103, %cst_39 {dimension_numbers = #tpu.dot_dimension_numbers<[1], [0], [0], [1], [0, 0, 1, 1], [], []>} : vector<8x8xf32>, vector<8x8xf32>, vector<8x8xf32> -> vector<8x8xf32>
    %105 = vector.extract_strided_slice %84 {offsets = [0, 48], sizes = [8, 8], strides = [1, 1]} : vector<8x64xf32> to vector<8x8xf32>
    %106 = vector.extract_strided_slice %86 {offsets = [48, 0], sizes = [8, 8], strides = [1, 1]} : vector<64x8xf32> to vector<8x8xf32>
    %cst_40 = arith.constant dense<0.000000e+00> : vector<8x8xf32>
    %107 = tpu.matmul %105, %106, %cst_40 {dimension_numbers = #tpu.dot_dimension_numbers<[1], [0], [0], [1], [0, 0, 1, 1], [], []>} : vector<8x8xf32>, vector<8x8xf32>, vector<8x8xf32> -> vector<8x8xf32>
    %108 = vector.extract_strided_slice %84 {offsets = [0, 56], sizes = [8, 8], strides = [1, 1]} : vector<8x64xf32> to vector<8x8xf32>
    %109 = vector.extract_strided_slice %86 {offsets = [56, 0], sizes = [8, 8], strides = [1, 1]} : vector<64x8xf32> to vector<8x8xf32>
    %cst_41 = arith.constant dense<0.000000e+00> : vector<8x8xf32>
    %110 = tpu.matmul %108, %109, %cst_41 {dimension_numbers = #tpu.dot_dimension_numbers<[1], [0], [0], [1], [0, 0, 1, 1], [], []>} : vector<8x8xf32>, vector<8x8xf32>, vector<8x8xf32> -> vector<8x8xf32>
    %111 = tpu.concatenate %62, %65, %68, %71, %74, %77, %80, %83, %89, %92, %95, %98, %101, %104, %107, %110 in 0 : vector<8x8xf32>, vector<8x8xf32>, vector<8x8xf32>, vector<8x8xf32>, vector<8x8xf32>, vector<8x8xf32>, vector<8x8xf32>, vector<8x8xf32>, vector<8x8xf32>, vector<8x8xf32>, vector<8x8xf32>, vector<8x8xf32>, vector<8x8xf32>, vector<8x8xf32>, vector<8x8xf32>, vector<8x8xf32> -> vector<128x8xf32>
    %cst_42 = arith.constant 0.353553385 : f32
    %112 = vector.broadcast %cst_42 : f32 to vector<128x8xf32>
    %113 = arith.mulf %111, %112 : vector<128x8xf32>
    %cst_43 = arith.constant dense<0xFF800000> : vector<128xf32>
    %114 = vector.multi_reduction <maximumf>, %113, %cst_43 [1] : vector<128x8xf32> to vector<128xf32>
    %115 = vector.shape_cast %114 : vector<128xf32> to vector<128x1xf32>
    %116 = vector.broadcast %115 : vector<128x1xf32> to vector<128x8xf32>
    %117 = arith.subf %113, %116 : vector<128x8xf32>
    %118 = math.exp %117 : vector<128x8xf32>
    %cst_44 = arith.constant dense<0.000000e+00> : vector<128xf32>
    %119 = vector.multi_reduction <add>, %118, %cst_44 [1] : vector<128x8xf32> to vector<128xf32>
    %120 = vector.shape_cast %119 : vector<128xf32> to vector<128x1xf32>
    %121 = tpu.reciprocal %120 {approx = true} : vector<128x1xf32> -> vector<128x1xf32>
    %122 = vector.broadcast %121 : vector<128x1xf32> to vector<128x8xf32>
    %123 = arith.mulf %118, %122 : vector<128x8xf32>
    %124 = vector.extract_strided_slice %55 {offsets = [0, 0], sizes = [8, 64], strides = [1, 1]} : vector<16x64xf32> to vector<8x64xf32>
    %cst_45 = arith.constant 0.000000e+00 : f32
    %125 = vector.broadcast %cst_45 : f32 to vector<8x64xf32>
    %126 = vector.extract_strided_slice %123 {offsets = [0, 0], sizes = [8, 8], strides = [1, 1]} : vector<128x8xf32> to vector<8x8xf32>
    %127 = vector.extract_strided_slice %124 {offsets = [0, 0], sizes = [8, 8], strides = [1, 1]} : vector<8x64xf32> to vector<8x8xf32>
    %cst_46 = arith.constant dense<0.000000e+00> : vector<8x8xf32>
    %128 = tpu.matmul %126, %127, %cst_46 {dimension_numbers = #tpu.dot_dimension_numbers<[1], [0], [0], [1], [0, 0, 1, 1], [], []>} : vector<8x8xf32>, vector<8x8xf32>, vector<8x8xf32> -> vector<8x8xf32>
    %129 = vector.extract_strided_slice %56 {offsets = [0, 0], sizes = [8, 64], strides = [1, 1]} : vector<64x64xf32> to vector<8x64xf32>
    %cst_47 = arith.constant dense<0.000000e+00> : vector<8x64xf32>
    %130 = tpu.matmul %128, %129, %cst_47 {dimension_numbers = #tpu.dot_dimension_numbers<[1], [0], [0], [1], [0, 0, 1, 1], [], []>} : vector<8x8xf32>, vector<8x64xf32>, vector<8x64xf32> -> vector<8x64xf32>
    %131 = arith.addf %125, %130 : vector<8x64xf32>
    %132 = vector.extract_strided_slice %123 {offsets = [8, 0], sizes = [8, 8], strides = [1, 1]} : vector<128x8xf32> to vector<8x8xf32>
    %133 = vector.extract_strided_slice %124 {offsets = [0, 8], sizes = [8, 8], strides = [1, 1]} : vector<8x64xf32> to vector<8x8xf32>
    %cst_48 = arith.constant dense<0.000000e+00> : vector<8x8xf32>
    %134 = tpu.matmul %132, %133, %cst_48 {dimension_numbers = #tpu.dot_dimension_numbers<[1], [0], [0], [1], [0, 0, 1, 1], [], []>} : vector<8x8xf32>, vector<8x8xf32>, vector<8x8xf32> -> vector<8x8xf32>
    %135 = vector.extract_strided_slice %56 {offsets = [8, 0], sizes = [8, 64], strides = [1, 1]} : vector<64x64xf32> to vector<8x64xf32>
    %cst_49 = arith.constant dense<0.000000e+00> : vector<8x64xf32>
    %136 = tpu.matmul %134, %135, %cst_49 {dimension_numbers = #tpu.dot_dimension_numbers<[1], [0], [0], [1], [0, 0, 1, 1], [], []>} : vector<8x8xf32>, vector<8x64xf32>, vector<8x64xf32> -> vector<8x64xf32>
    %137 = arith.addf %131, %136 : vector<8x64xf32>
    %138 = vector.extract_strided_slice %123 {offsets = [16, 0], sizes = [8, 8], strides = [1, 1]} : vector<128x8xf32> to vector<8x8xf32>
    %139 = vector.extract_strided_slice %124 {offsets = [0, 16], sizes = [8, 8], strides = [1, 1]} : vector<8x64xf32> to vector<8x8xf32>
    %cst_50 = arith.constant dense<0.000000e+00> : vector<8x8xf32>
    %140 = tpu.matmul %138, %139, %cst_50 {dimension_numbers = #tpu.dot_dimension_numbers<[1], [0], [0], [1], [0, 0, 1, 1], [], []>} : vector<8x8xf32>, vector<8x8xf32>, vector<8x8xf32> -> vector<8x8xf32>
    %141 = vector.extract_strided_slice %56 {offsets = [16, 0], sizes = [8, 64], strides = [1, 1]} : vector<64x64xf32> to vector<8x64xf32>
    %cst_51 = arith.constant dense<0.000000e+00> : vector<8x64xf32>
    %142 = tpu.matmul %140, %141, %cst_51 {dimension_numbers = #tpu.dot_dimension_numbers<[1], [0], [0], [1], [0, 0, 1, 1], [], []>} : vector<8x8xf32>, vector<8x64xf32>, vector<8x64xf32> -> vector<8x64xf32>
    %143 = arith.addf %137, %142 : vector<8x64xf32>
    %144 = vector.extract_strided_slice %123 {offsets = [24, 0], sizes = [8, 8], strides = [1, 1]} : vector<128x8xf32> to vector<8x8xf32>
    %145 = vector.extract_strided_slice %124 {offsets = [0, 24], sizes = [8, 8], strides = [1, 1]} : vector<8x64xf32> to vector<8x8xf32>
    %cst_52 = arith.constant dense<0.000000e+00> : vector<8x8xf32>
    %146 = tpu.matmul %144, %145, %cst_52 {dimension_numbers = #tpu.dot_dimension_numbers<[1], [0], [0], [1], [0, 0, 1, 1], [], []>} : vector<8x8xf32>, vector<8x8xf32>, vector<8x8xf32> -> vector<8x8xf32>
    %147 = vector.extract_strided_slice %56 {offsets = [24, 0], sizes = [8, 64], strides = [1, 1]} : vector<64x64xf32> to vector<8x64xf32>
    %cst_53 = arith.constant dense<0.000000e+00> : vector<8x64xf32>
    %148 = tpu.matmul %146, %147, %cst_53 {dimension_numbers = #tpu.dot_dimension_numbers<[1], [0], [0], [1], [0, 0, 1, 1], [], []>} : vector<8x8xf32>, vector<8x64xf32>, vector<8x64xf32> -> vector<8x64xf32>
    %149 = arith.addf %143, %148 : vector<8x64xf32>
    %150 = vector.extract_strided_slice %123 {offsets = [32, 0], sizes = [8, 8], strides = [1, 1]} : vector<128x8xf32> to vector<8x8xf32>
    %151 = vector.extract_strided_slice %124 {offsets = [0, 32], sizes = [8, 8], strides = [1, 1]} : vector<8x64xf32> to vector<8x8xf32>
    %cst_54 = arith.constant dense<0.000000e+00> : vector<8x8xf32>
    %152 = tpu.matmul %150, %151, %cst_54 {dimension_numbers = #tpu.dot_dimension_numbers<[1], [0], [0], [1], [0, 0, 1, 1], [], []>} : vector<8x8xf32>, vector<8x8xf32>, vector<8x8xf32> -> vector<8x8xf32>
    %153 = vector.extract_strided_slice %56 {offsets = [32, 0], sizes = [8, 64], strides = [1, 1]} : vector<64x64xf32> to vector<8x64xf32>
    %cst_55 = arith.constant dense<0.000000e+00> : vector<8x64xf32>
    %154 = tpu.matmul %152, %153, %cst_55 {dimension_numbers = #tpu.dot_dimension_numbers<[1], [0], [0], [1], [0, 0, 1, 1], [], []>} : vector<8x8xf32>, vector<8x64xf32>, vector<8x64xf32> -> vector<8x64xf32>
    %155 = arith.addf %149, %154 : vector<8x64xf32>
    %156 = vector.extract_strided_slice %123 {offsets = [40, 0], sizes = [8, 8], strides = [1, 1]} : vector<128x8xf32> to vector<8x8xf32>
    %157 = vector.extract_strided_slice %124 {offsets = [0, 40], sizes = [8, 8], strides = [1, 1]} : vector<8x64xf32> to vector<8x8xf32>
    %cst_56 = arith.constant dense<0.000000e+00> : vector<8x8xf32>
    %158 = tpu.matmul %156, %157, %cst_56 {dimension_numbers = #tpu.dot_dimension_numbers<[1], [0], [0], [1], [0, 0, 1, 1], [], []>} : vector<8x8xf32>, vector<8x8xf32>, vector<8x8xf32> -> vector<8x8xf32>
    %159 = vector.extract_strided_slice %56 {offsets = [40, 0], sizes = [8, 64], strides = [1, 1]} : vector<64x64xf32> to vector<8x64xf32>
    %cst_57 = arith.constant dense<0.000000e+00> : vector<8x64xf32>
    %160 = tpu.matmul %158, %159, %cst_57 {dimension_numbers = #tpu.dot_dimension_numbers<[1], [0], [0], [1], [0, 0, 1, 1], [], []>} : vector<8x8xf32>, vector<8x64xf32>, vector<8x64xf32> -> vector<8x64xf32>
    %161 = arith.addf %155, %160 : vector<8x64xf32>
    %162 = vector.extract_strided_slice %123 {offsets = [48, 0], sizes = [8, 8], strides = [1, 1]} : vector<128x8xf32> to vector<8x8xf32>
    %163 = vector.extract_strided_slice %124 {offsets = [0, 48], sizes = [8, 8], strides = [1, 1]} : vector<8x64xf32> to vector<8x8xf32>
    %cst_58 = arith.constant dense<0.000000e+00> : vector<8x8xf32>
    %164 = tpu.matmul %162, %163, %cst_58 {dimension_numbers = #tpu.dot_dimension_numbers<[1], [0], [0], [1], [0, 0, 1, 1], [], []>} : vector<8x8xf32>, vector<8x8xf32>, vector<8x8xf32> -> vector<8x8xf32>
    %165 = vector.extract_strided_slice %56 {offsets = [48, 0], sizes = [8, 64], strides = [1, 1]} : vector<64x64xf32> to vector<8x64xf32>
    %cst_59 = arith.constant dense<0.000000e+00> : vector<8x64xf32>
    %166 = tpu.matmul %164, %165, %cst_59 {dimension_numbers = #tpu.dot_dimension_numbers<[1], [0], [0], [1], [0, 0, 1, 1], [], []>} : vector<8x8xf32>, vector<8x64xf32>, vector<8x64xf32> -> vector<8x64xf32>
    %167 = arith.addf %161, %166 : vector<8x64xf32>
    %168 = vector.extract_strided_slice %123 {offsets = [56, 0], sizes = [8, 8], strides = [1, 1]} : vector<128x8xf32> to vector<8x8xf32>
    %169 = vector.extract_strided_slice %124 {offsets = [0, 56], sizes = [8, 8], strides = [1, 1]} : vector<8x64xf32> to vector<8x8xf32>
    %cst_60 = arith.constant dense<0.000000e+00> : vector<8x8xf32>
    %170 = tpu.matmul %168, %169, %cst_60 {dimension_numbers = #tpu.dot_dimension_numbers<[1], [0], [0], [1], [0, 0, 1, 1], [], []>} : vector<8x8xf32>, vector<8x8xf32>, vector<8x8xf32> -> vector<8x8xf32>
    %171 = vector.extract_strided_slice %56 {offsets = [56, 0], sizes = [8, 64], strides = [1, 1]} : vector<64x64xf32> to vector<8x64xf32>
    %cst_61 = arith.constant dense<0.000000e+00> : vector<8x64xf32>
    %172 = tpu.matmul %170, %171, %cst_61 {dimension_numbers = #tpu.dot_dimension_numbers<[1], [0], [0], [1], [0, 0, 1, 1], [], []>} : vector<8x8xf32>, vector<8x64xf32>, vector<8x64xf32> -> vector<8x64xf32>
    %173 = arith.addf %167, %172 : vector<8x64xf32>
    %174 = vector.extract_strided_slice %55 {offsets = [8, 0], sizes = [8, 64], strides = [1, 1]} : vector<16x64xf32> to vector<8x64xf32>
    %cst_62 = arith.constant 0.000000e+00 : f32
    %175 = vector.broadcast %cst_62 : f32 to vector<8x64xf32>
    %176 = vector.extract_strided_slice %123 {offsets = [64, 0], sizes = [8, 8], strides = [1, 1]} : vector<128x8xf32> to vector<8x8xf32>
    %177 = vector.extract_strided_slice %174 {offsets = [0, 0], sizes = [8, 8], strides = [1, 1]} : vector<8x64xf32> to vector<8x8xf32>
    %cst_63 = arith.constant dense<0.000000e+00> : vector<8x8xf32>
    %178 = tpu.matmul %176, %177, %cst_63 {dimension_numbers = #tpu.dot_dimension_numbers<[1], [0], [0], [1], [0, 0, 1, 1], [], []>} : vector<8x8xf32>, vector<8x8xf32>, vector<8x8xf32> -> vector<8x8xf32>
    %179 = vector.extract_strided_slice %56 {offsets = [0, 0], sizes = [8, 64], strides = [1, 1]} : vector<64x64xf32> to vector<8x64xf32>
    %cst_64 = arith.constant dense<0.000000e+00> : vector<8x64xf32>
    %180 = tpu.matmul %178, %179, %cst_64 {dimension_numbers = #tpu.dot_dimension_numbers<[1], [0], [0], [1], [0, 0, 1, 1], [], []>} : vector<8x8xf32>, vector<8x64xf32>, vector<8x64xf32> -> vector<8x64xf32>
    %181 = arith.addf %175, %180 : vector<8x64xf32>
    %182 = vector.extract_strided_slice %123 {offsets = [72, 0], sizes = [8, 8], strides = [1, 1]} : vector<128x8xf32> to vector<8x8xf32>
    %183 = vector.extract_strided_slice %174 {offsets = [0, 8], sizes = [8, 8], strides = [1, 1]} : vector<8x64xf32> to vector<8x8xf32>
    %cst_65 = arith.constant dense<0.000000e+00> : vector<8x8xf32>
    %184 = tpu.matmul %182, %183, %cst_65 {dimension_numbers = #tpu.dot_dimension_numbers<[1], [0], [0], [1], [0, 0, 1, 1], [], []>} : vector<8x8xf32>, vector<8x8xf32>, vector<8x8xf32> -> vector<8x8xf32>
    %185 = vector.extract_strided_slice %56 {offsets = [8, 0], sizes = [8, 64], strides = [1, 1]} : vector<64x64xf32> to vector<8x64xf32>
    %cst_66 = arith.constant dense<0.000000e+00> : vector<8x64xf32>
    %186 = tpu.matmul %184, %185, %cst_66 {dimension_numbers = #tpu.dot_dimension_numbers<[1], [0], [0], [1], [0, 0, 1, 1], [], []>} : vector<8x8xf32>, vector<8x64xf32>, vector<8x64xf32> -> vector<8x64xf32>
    %187 = arith.addf %181, %186 : vector<8x64xf32>
    %188 = vector.extract_strided_slice %123 {offsets = [80, 0], sizes = [8, 8], strides = [1, 1]} : vector<128x8xf32> to vector<8x8xf32>
    %189 = vector.extract_strided_slice %174 {offsets = [0, 16], sizes = [8, 8], strides = [1, 1]} : vector<8x64xf32> to vector<8x8xf32>
    %cst_67 = arith.constant dense<0.000000e+00> : vector<8x8xf32>
    %190 = tpu.matmul %188, %189, %cst_67 {dimension_numbers = #tpu.dot_dimension_numbers<[1], [0], [0], [1], [0, 0, 1, 1], [], []>} : vector<8x8xf32>, vector<8x8xf32>, vector<8x8xf32> -> vector<8x8xf32>
    %191 = vector.extract_strided_slice %56 {offsets = [16, 0], sizes = [8, 64], strides = [1, 1]} : vector<64x64xf32> to vector<8x64xf32>
    %cst_68 = arith.constant dense<0.000000e+00> : vector<8x64xf32>
    %192 = tpu.matmul %190, %191, %cst_68 {dimension_numbers = #tpu.dot_dimension_numbers<[1], [0], [0], [1], [0, 0, 1, 1], [], []>} : vector<8x8xf32>, vector<8x64xf32>, vector<8x64xf32> -> vector<8x64xf32>
    %193 = arith.addf %187, %192 : vector<8x64xf32>
    %194 = vector.extract_strided_slice %123 {offsets = [88, 0], sizes = [8, 8], strides = [1, 1]} : vector<128x8xf32> to vector<8x8xf32>
    %195 = vector.extract_strided_slice %174 {offsets = [0, 24], sizes = [8, 8], strides = [1, 1]} : vector<8x64xf32> to vector<8x8xf32>
    %cst_69 = arith.constant dense<0.000000e+00> : vector<8x8xf32>
    %196 = tpu.matmul %194, %195, %cst_69 {dimension_numbers = #tpu.dot_dimension_numbers<[1], [0], [0], [1], [0, 0, 1, 1], [], []>} : vector<8x8xf32>, vector<8x8xf32>, vector<8x8xf32> -> vector<8x8xf32>
    %197 = vector.extract_strided_slice %56 {offsets = [24, 0], sizes = [8, 64], strides = [1, 1]} : vector<64x64xf32> to vector<8x64xf32>
    %cst_70 = arith.constant dense<0.000000e+00> : vector<8x64xf32>
    %198 = tpu.matmul %196, %197, %cst_70 {dimension_numbers = #tpu.dot_dimension_numbers<[1], [0], [0], [1], [0, 0, 1, 1], [], []>} : vector<8x8xf32>, vector<8x64xf32>, vector<8x64xf32> -> vector<8x64xf32>
    %199 = arith.addf %193, %198 : vector<8x64xf32>
    %200 = vector.extract_strided_slice %123 {offsets = [96, 0], sizes = [8, 8], strides = [1, 1]} : vector<128x8xf32> to vector<8x8xf32>
    %201 = vector.extract_strided_slice %174 {offsets = [0, 32], sizes = [8, 8], strides = [1, 1]} : vector<8x64xf32> to vector<8x8xf32>
    %cst_71 = arith.constant dense<0.000000e+00> : vector<8x8xf32>
    %202 = tpu.matmul %200, %201, %cst_71 {dimension_numbers = #tpu.dot_dimension_numbers<[1], [0], [0], [1], [0, 0, 1, 1], [], []>} : vector<8x8xf32>, vector<8x8xf32>, vector<8x8xf32> -> vector<8x8xf32>
    %203 = vector.extract_strided_slice %56 {offsets = [32, 0], sizes = [8, 64], strides = [1, 1]} : vector<64x64xf32> to vector<8x64xf32>
    %cst_72 = arith.constant dense<0.000000e+00> : vector<8x64xf32>
    %204 = tpu.matmul %202, %203, %cst_72 {dimension_numbers = #tpu.dot_dimension_numbers<[1], [0], [0], [1], [0, 0, 1, 1], [], []>} : vector<8x8xf32>, vector<8x64xf32>, vector<8x64xf32> -> vector<8x64xf32>
    %205 = arith.addf %199, %204 : vector<8x64xf32>
    %206 = vector.extract_strided_slice %123 {offsets = [104, 0], sizes = [8, 8], strides = [1, 1]} : vector<128x8xf32> to vector<8x8xf32>
    %207 = vector.extract_strided_slice %174 {offsets = [0, 40], sizes = [8, 8], strides = [1, 1]} : vector<8x64xf32> to vector<8x8xf32>
    %cst_73 = arith.constant dense<0.000000e+00> : vector<8x8xf32>
    %208 = tpu.matmul %206, %207, %cst_73 {dimension_numbers = #tpu.dot_dimension_numbers<[1], [0], [0], [1], [0, 0, 1, 1], [], []>} : vector<8x8xf32>, vector<8x8xf32>, vector<8x8xf32> -> vector<8x8xf32>
    %209 = vector.extract_strided_slice %56 {offsets = [40, 0], sizes = [8, 64], strides = [1, 1]} : vector<64x64xf32> to vector<8x64xf32>
    %cst_74 = arith.constant dense<0.000000e+00> : vector<8x64xf32>
    %210 = tpu.matmul %208, %209, %cst_74 {dimension_numbers = #tpu.dot_dimension_numbers<[1], [0], [0], [1], [0, 0, 1, 1], [], []>} : vector<8x8xf32>, vector<8x64xf32>, vector<8x64xf32> -> vector<8x64xf32>
    %211 = arith.addf %205, %210 : vector<8x64xf32>
    %212 = vector.extract_strided_slice %123 {offsets = [112, 0], sizes = [8, 8], strides = [1, 1]} : vector<128x8xf32> to vector<8x8xf32>
    %213 = vector.extract_strided_slice %174 {offsets = [0, 48], sizes = [8, 8], strides = [1, 1]} : vector<8x64xf32> to vector<8x8xf32>
    %cst_75 = arith.constant dense<0.000000e+00> : vector<8x8xf32>
    %214 = tpu.matmul %212, %213, %cst_75 {dimension_numbers = #tpu.dot_dimension_numbers<[1], [0], [0], [1], [0, 0, 1, 1], [], []>} : vector<8x8xf32>, vector<8x8xf32>, vector<8x8xf32> -> vector<8x8xf32>
    %215 = vector.extract_strided_slice %56 {offsets = [48, 0], sizes = [8, 64], strides = [1, 1]} : vector<64x64xf32> to vector<8x64xf32>
    %cst_76 = arith.constant dense<0.000000e+00> : vector<8x64xf32>
    %216 = tpu.matmul %214, %215, %cst_76 {dimension_numbers = #tpu.dot_dimension_numbers<[1], [0], [0], [1], [0, 0, 1, 1], [], []>} : vector<8x8xf32>, vector<8x64xf32>, vector<8x64xf32> -> vector<8x64xf32>
    %217 = arith.addf %211, %216 : vector<8x64xf32>
    %218 = vector.extract_strided_slice %123 {offsets = [120, 0], sizes = [8, 8], strides = [1, 1]} : vector<128x8xf32> to vector<8x8xf32>
    %219 = vector.extract_strided_slice %174 {offsets = [0, 56], sizes = [8, 8], strides = [1, 1]} : vector<8x64xf32> to vector<8x8xf32>
    %cst_77 = arith.constant dense<0.000000e+00> : vector<8x8xf32>
    %220 = tpu.matmul %218, %219, %cst_77 {dimension_numbers = #tpu.dot_dimension_numbers<[1], [0], [0], [1], [0, 0, 1, 1], [], []>} : vector<8x8xf32>, vector<8x8xf32>, vector<8x8xf32> -> vector<8x8xf32>
    %221 = vector.extract_strided_slice %56 {offsets = [56, 0], sizes = [8, 64], strides = [1, 1]} : vector<64x64xf32> to vector<8x64xf32>
    %cst_78 = arith.constant dense<0.000000e+00> : vector<8x64xf32>
    %222 = tpu.matmul %220, %221, %cst_78 {dimension_numbers = #tpu.dot_dimension_numbers<[1], [0], [0], [1], [0, 0, 1, 1], [], []>} : vector<8x8xf32>, vector<8x64xf32>, vector<8x64xf32> -> vector<8x64xf32>
    %223 = arith.addf %217, %222 : vector<8x64xf32>
    %224 = tpu.concatenate %173, %223 in 0 : vector<8x64xf32>, vector<8x64xf32> -> vector<16x64xf32>
    %c0_79 = arith.constant 0 : index
    %c0_80 = arith.constant 0 : index
    %225 = vector.load %arg8[%c0_79, %c0_80] : memref<1x64xf32, #tpu.memory_space<vmem>>, vector<1x64xf32>
    %226 = vector.broadcast %225 : vector<1x64xf32> to vector<16x64xf32>
    %227 = arith.addf %224, %226 : vector<16x64xf32>
    %228 = arith.addf %1, %227 : vector<16x64xf32>
    %c0_81 = arith.constant 0 : index
    %c0_82 = arith.constant 0 : index
    %229 = vector.load %arg9[%c0_81, %c0_82] : memref<1x64xf32, #tpu.memory_space<vmem>>, vector<1x64xf32>
    %c0_83 = arith.constant 0 : index
    %c0_84 = arith.constant 0 : index
    %230 = vector.load %arg10[%c0_83, %c0_84] : memref<1x64xf32, #tpu.memory_space<vmem>>, vector<1x64xf32>
    %cst_85 = arith.constant dense<0.000000e+00> : vector<16xf32>
    %231 = vector.multi_reduction <add>, %228, %cst_85 [1] : vector<16x64xf32> to vector<16xf32>
    %232 = vector.shape_cast %231 : vector<16xf32> to vector<16x1xf32>
    %cst_86 = arith.constant 6.400000e+01 : f32
    %233 = vector.broadcast %cst_86 : f32 to vector<16x1xf32>
    %234 = arith.divf %232, %233 : vector<16x1xf32>
    %235 = vector.broadcast %234 : vector<16x1xf32> to vector<16x64xf32>
    %236 = arith.subf %228, %235 : vector<16x64xf32>
    %237 = arith.mulf %236, %236 : vector<16x64xf32>
    %cst_87 = arith.constant dense<0.000000e+00> : vector<16xf32>
    %238 = vector.multi_reduction <add>, %237, %cst_87 [1] : vector<16x64xf32> to vector<16xf32>
    %239 = vector.shape_cast %238 : vector<16xf32> to vector<16x1xf32>
    %cst_88 = arith.constant 6.400000e+01 : f32
    %240 = vector.broadcast %cst_88 : f32 to vector<16x1xf32>
    %241 = arith.divf %239, %240 : vector<16x1xf32>
    %242 = vector.broadcast %234 : vector<16x1xf32> to vector<16x64xf32>
    %243 = arith.subf %228, %242 : vector<16x64xf32>
    %cst_89 = arith.constant 9.99999974E-6 : f32
    %244 = vector.broadcast %cst_89 : f32 to vector<16x1xf32>
    %245 = arith.addf %241, %244 : vector<16x1xf32>
    %246 = math.rsqrt %245 : vector<16x1xf32>
    %247 = vector.broadcast %246 : vector<16x1xf32> to vector<16x64xf32>
    %248 = arith.mulf %243, %247 : vector<16x64xf32>
    %249 = vector.broadcast %229 : vector<1x64xf32> to vector<16x64xf32>
    %250 = arith.mulf %248, %249 : vector<16x64xf32>
    %251 = vector.broadcast %230 : vector<1x64xf32> to vector<16x64xf32>
    %252 = arith.addf %250, %251 : vector<16x64xf32>
    %c0_90 = arith.constant 0 : index
    %c0_91 = arith.constant 0 : index
    %253 = vector.load %arg11[%c0_90, %c0_91] : memref<64x256xf32, #tpu.memory_space<vmem>>, vector<64x256xf32>
    %cst_92 = arith.constant dense<0.000000e+00> : vector<16x256xf32>
    %254 = tpu.matmul %252, %253, %cst_92 {dimension_numbers = #tpu.dot_dimension_numbers<[1], [0], [0], [1], [0, 0, 1, 1], [], []>} : vector<16x64xf32>, vector<64x256xf32>, vector<16x256xf32> -> vector<16x256xf32>
    %c0_93 = arith.constant 0 : index
    %c0_94 = arith.constant 0 : index
    %255 = vector.load %arg12[%c0_93, %c0_94] : memref<1x256xf32, #tpu.memory_space<vmem>>, vector<1x256xf32>
    %256 = vector.broadcast %255 : vector<1x256xf32> to vector<16x256xf32>
    %257 = arith.addf %254, %256 : vector<16x256xf32>
    %cst_95 = arith.constant 5.000000e-01 : f32
    %258 = vector.broadcast %cst_95 : f32 to vector<16x256xf32>
    %259 = arith.mulf %258, %257 : vector<16x256xf32>
    %cst_96 = arith.constant 2.000000e+00 : f32
    %260 = math.sqrt %cst_96 : f32
    %cst_97 = arith.constant 1.000000e+00 : f32
    %261 = arith.divf %cst_97, %260 : f32
    %262 = vector.broadcast %261 : f32 to vector<16x256xf32>
    %263 = arith.mulf %257, %262 : vector<16x256xf32>
    %264 = math.erf %263 : vector<16x256xf32>
    %cst_98 = arith.constant 1.000000e+00 : f32
    %265 = vector.broadcast %cst_98 : f32 to vector<16x256xf32>
    %266 = arith.addf %265, %264 : vector<16x256xf32>
    %267 = arith.mulf %259, %266 : vector<16x256xf32>
    %c0_99 = arith.constant 0 : index
    %c0_100 = arith.constant 0 : index
    %268 = vector.load %arg13[%c0_99, %c0_100] : memref<1x256xf32, #tpu.memory_space<vmem>>, vector<1x256xf32>
    %c0_101 = arith.constant 0 : index
    %c0_102 = arith.constant 0 : index
    %269 = vector.load %arg14[%c0_101, %c0_102] : memref<1x256xf32, #tpu.memory_space<vmem>>, vector<1x256xf32>
    %cst_103 = arith.constant dense<0.000000e+00> : vector<16xf32>
    %270 = vector.multi_reduction <add>, %267, %cst_103 [1] : vector<16x256xf32> to vector<16xf32>
    %271 = vector.shape_cast %270 : vector<16xf32> to vector<16x1xf32>
    %cst_104 = arith.constant 2.560000e+02 : f32
    %272 = vector.broadcast %cst_104 : f32 to vector<16x1xf32>
    %273 = arith.divf %271, %272 : vector<16x1xf32>
    %274 = vector.broadcast %273 : vector<16x1xf32> to vector<16x256xf32>
    %275 = arith.subf %267, %274 : vector<16x256xf32>
    %276 = arith.mulf %275, %275 : vector<16x256xf32>
    %cst_105 = arith.constant dense<0.000000e+00> : vector<16xf32>
    %277 = vector.multi_reduction <add>, %276, %cst_105 [1] : vector<16x256xf32> to vector<16xf32>
    %278 = vector.shape_cast %277 : vector<16xf32> to vector<16x1xf32>
    %cst_106 = arith.constant 2.560000e+02 : f32
    %279 = vector.broadcast %cst_106 : f32 to vector<16x1xf32>
    %280 = arith.divf %278, %279 : vector<16x1xf32>
    %281 = vector.broadcast %273 : vector<16x1xf32> to vector<16x256xf32>
    %282 = arith.subf %267, %281 : vector<16x256xf32>
    %cst_107 = arith.constant 9.99999974E-6 : f32
    %283 = vector.broadcast %cst_107 : f32 to vector<16x1xf32>
    %284 = arith.addf %280, %283 : vector<16x1xf32>
    %285 = math.rsqrt %284 : vector<16x1xf32>
    %286 = vector.broadcast %285 : vector<16x1xf32> to vector<16x256xf32>
    %287 = arith.mulf %282, %286 : vector<16x256xf32>
    %288 = vector.broadcast %268 : vector<1x256xf32> to vector<16x256xf32>
    %289 = arith.mulf %287, %288 : vector<16x256xf32>
    %290 = vector.broadcast %269 : vector<1x256xf32> to vector<16x256xf32>
    %291 = arith.addf %289, %290 : vector<16x256xf32>
    %c0_108 = arith.constant 0 : index
    %c0_109 = arith.constant 0 : index
    %292 = vector.load %arg15[%c0_108, %c0_109] : memref<256x64xf32, #tpu.memory_space<vmem>>, vector<256x64xf32>
    %cst_110 = arith.constant dense<0.000000e+00> : vector<16x64xf32>
    %293 = tpu.matmul %291, %292, %cst_110 {dimension_numbers = #tpu.dot_dimension_numbers<[1], [0], [0], [1], [0, 0, 1, 1], [], []>} : vector<16x256xf32>, vector<256x64xf32>, vector<16x64xf32> -> vector<16x64xf32>
    %c0_111 = arith.constant 0 : index
    %c0_112 = arith.constant 0 : index
    %294 = vector.load %arg16[%c0_111, %c0_112] : memref<1x64xf32, #tpu.memory_space<vmem>>, vector<1x64xf32>
    %295 = vector.broadcast %294 : vector<1x64xf32> to vector<16x64xf32>
    %296 = arith.addf %293, %295 : vector<16x64xf32>
    %297 = arith.addf %228, %296 : vector<16x64xf32>
    %298 = vector.shape_cast %297 : vector<16x64xf32> to vector<2x8x64xf32>
    %c0_113 = arith.constant 0 : index
    %c0_114 = arith.constant 0 : index
    %c0_115 = arith.constant 0 : index
    %299 = vector.load %arg17[%c0_113, %c0_114, %c0_115] : memref<2x8x64xf32, #tpu.memory_space<vmem>>, vector<2x8x64xf32>
    tpu.vector_store %arg17[%c0_113, %c0_114, %c0_115], %298 {strides = array<i32>} : memref<2x8x64xf32, #tpu.memory_space<vmem>>, vector<2x8x64xf32>,
    return
  }
  func.func @transform_0(%arg0: i32) -> (i32, i32, i32) {
    %c0_i32 = arith.constant 0 : i32
    %c0_i32_0 = arith.constant 0 : i32
    %c0_i32_1 = arith.constant 0 : i32
    return %arg0, %c0_i32, %c0_i32_0 : i32, i32, i32
  }
  func.func @transform_1(%arg0: i32) -> (i32, i32, i32) {
    %c0_i32 = arith.constant 0 : i32
    %c0_i32_0 = arith.constant 0 : i32
    %c0_i32_1 = arith.constant 0 : i32
    return %arg0, %c0_i32, %c0_i32_0 : i32, i32, i32
  }
  func.func @transform_2(%arg0: i32) -> (i32, i32) {
    %c0_i32 = arith.constant 0 : i32
    %c0_i32_0 = arith.constant 0 : i32
    %c0_i32_1 = arith.constant 0 : i32
    return %c0_i32, %c0_i32_0 : i32, i32
  }
  func.func @transform_3(%arg0: i32) -> (i32, i32) {
    %c0_i32 = arith.constant 0 : i32
    %c0_i32_0 = arith.constant 0 : i32
    %c0_i32_1 = arith.constant 0 : i32
    return %c0_i32, %c0_i32_0 : i32, i32
  }
  func.func @transform_4(%arg0: i32) -> (i32, i32) {
    %c0_i32 = arith.constant 0 : i32
    %c0_i32_0 = arith.constant 0 : i32
    %c0_i32_1 = arith.constant 0 : i32
    return %c0_i32, %c0_i32_0 : i32, i32
  }
  func.func @transform_5(%arg0: i32) -> (i32, i32) {
    %c0_i32 = arith.constant 0 : i32
    %c0_i32_0 = arith.constant 0 : i32
    %c0_i32_1 = arith.constant 0 : i32
    return %c0_i32, %c0_i32_0 : i32, i32
  }
  func.func @transform_6(%arg0: i32) -> (i32, i32) {
    %c0_i32 = arith.constant 0 : i32
    %c0_i32_0 = arith.constant 0 : i32
    %c0_i32_1 = arith.constant 0 : i32
    return %c0_i32, %c0_i32_0 : i32, i32
  }
  func.func @transform_7(%arg0: i32) -> (i32, i32) {
    %c0_i32 = arith.constant 0 : i32
    %c0_i32_0 = arith.constant 0 : i32
    %c0_i32_1 = arith.constant 0 : i32
    return %c0_i32, %c0_i32_0 : i32, i32
  }
  func.func @transform_8(%arg0: i32) -> (i32, i32) {
    %c0_i32 = arith.constant 0 : i32
    %c0_i32_0 = arith.constant 0 : i32
    %c0_i32_1 = arith.constant 0 : i32
    return %c0_i32, %c0_i32_0 : i32, i32
  }
  func.func @transform_9(%arg0: i32) -> (i32, i32) {
    %c0_i32 = arith.constant 0 : i32
    %c0_i32_0 = arith.constant 0 : i32
    %c0_i32_1 = arith.constant 0 : i32
    return %c0_i32, %c0_i32_0 : i32, i32
  }
  func.func @transform_10(%arg0: i32) -> (i32, i32) {
    %c0_i32 = arith.constant 0 : i32
    %c0_i32_0 = arith.constant 0 : i32
    %c0_i32_1 = arith.constant 0 : i32
    return %c0_i32, %c0_i32_0 : i32, i32
  }
  func.func @transform_11(%arg0: i32) -> (i32, i32) {
    %c0_i32 = arith.constant 0 : i32
    %c0_i32_0 = arith.constant 0 : i32
    %c0_i32_1 = arith.constant 0 : i32
    return %c0_i32, %c0_i32_0 : i32, i32
  }
  func.func @transform_12(%arg0: i32) -> (i32, i32) {
    %c0_i32 = arith.constant 0 : i32
    %c0_i32_0 = arith.constant 0 : i32
    %c0_i32_1 = arith.constant 0 : i32
    return %c0_i32, %c0_i32_0 : i32, i32
  }
  func.func @transform_13(%arg0: i32) -> (i32, i32) {
    %c0_i32 = arith.constant 0 : i32
    %c0_i32_0 = arith.constant 0 : i32
    %c0_i32_1 = arith.constant 0 : i32
    return %c0_i32, %c0_i32_0 : i32, i32
  }
  func.func @transform_14(%arg0: i32) -> (i32, i32) {
    %c0_i32 = arith.constant 0 : i32
    %c0_i32_0 = arith.constant 0 : i32
    %c0_i32_1 = arith.constant 0 : i32
    return %c0_i32, %c0_i32_0 : i32, i32
  }
  func.func @transform_15(%arg0: i32) -> (i32, i32) {
    %c0_i32 = arith.constant 0 : i32
    %c0_i32_0 = arith.constant 0 : i32
    %c0_i32_1 = arith.constant 0 : i32
    return %c0_i32, %c0_i32_0 : i32, i32
  }
  func.func @transform_16(%arg0: i32) -> (i32, i32, i32) {
    %c0_i32 = arith.constant 0 : i32
    %c0_i32_0 = arith.constant 0 : i32
    %c0_i32_1 = arith.constant 0 : i32
    return %arg0, %c0_i32, %c0_i32_0 : i32, i32, i32
  }
}

</mosaic_0001>

<bundles_post_ra>
// kernel: cross_attention_block.1
= control target key start
LH: loop header
LB: loop body
LE: loop exit
PB: predicated region body
PF: predicated region fallthrough
CT: control target
= control target key end

     0   :  { %s6127_s0 = inlined_call_operand.vmem [shape: f32[2,8,64], index: 0, kind: input, shape index: {}]   ;;  %s6128_s1 = inlined_call_operand.vmem [shape: f32[2,8,64], index: 1, kind: input, shape index: {}]   ;;  %s6129_s2 = inlined_call_operand.vmem [shape: f32[1,64], index: 2, kind: input, shape index: {}]   ;;  %s6130_s3 = inlined_call_operand.vmem [shape: f32[1,64], index: 3, kind: input, shape index: {}]   ;;  %s6131_s4 = inlined_call_operand.vmem [shape: f32[64,64], index: 4, kind: input, shape index: {}]   ;;  %s6132_s5 = inlined_call_operand.vmem [shape: f32[64,128], index: 5, kind: input, shape index: {}]   ;;  %s6133_s6 = inlined_call_operand.vmem [shape: f32[64,64], index: 6, kind: input, shape index: {}]   ;;  %s6134_s7 = inlined_call_operand.vmem [shape: f32[1,64], index: 7, kind: input, shape index: {}]   ;;  %s6135_s8 = inlined_call_operand.vmem [shape: f32[1,64], index: 8, kind: input, shape index: {}]   ;;  %s6136_s9 = inlined_call_operand.vmem [shape: f32[1,64], index: 9, kind: input, shape index: {}]   ;;  %s6137_s10 = inlined_call_operand.vmem [shape: f32[64,256], index: 10, kind: input, shape index: {}]   ;;  %s6138_s11 = inlined_call_operand.vmem [shape: f32[1,256], index: 11, kind: input, shape index: {}]   ;;  %s6139_s12 = inlined_call_operand.vmem [shape: f32[1,256], index: 12, kind: input, shape index: {}]   ;;  %s6140_s13 = inlined_call_operand.vmem [shape: f32[1,256], index: 13, kind: input, shape index: {}]   ;;  %s6141_s14 = inlined_call_operand.vmem [shape: f32[256,64], index: 14, kind: input, shape index: {}]   ;;  %s6142_s15 = inlined_call_operand.vmem [shape: f32[1,64], index: 15, kind: input, shape index: {}]   ;;  %s6143_s16 = inlined_call_operand.hbm [shape: f32[2,8,64], index: 16, kind: output, shape index: {}]  }
   0x1   :  { %6145 = sst [smem:[#allocation5_spill]] %s6127_s0 }
   0x2   :  { %v56_v0 = vld [vmem:[%s6128_s1] sm:$0xff]  ;;  %vm60_vm0 = vcmask 523264   ;;  %v57_v1 = vld [vmem:[%s6128_s1 + $0x8] sm:$0xff]  ;;  %s6146_s27 = sld [smem:[#allocation5_spill]] }
   0x3   :  { %v104_v3 = vsel %vm60_vm0, %v56_v0, 0.0 }
   0x8   :  { %v54_v2 = vld [vmem:[%s6146_s27] sm:$0xff]  ;;  %v55_v5 = vld [vmem:[%s6146_s27 + $0x8] sm:$0xff] }
   0x9   :  { %v61_v4 = vsel %vm60_vm0, %v54_v2, 0.0 }
   0xa   :  { %21 = vsyncpa [#allocation3], 0  ;;  %105 = vadd.xlane.f32.xlu0 %v104_v3  ;;  %62 = vadd.xlane.f32.xlu1 %v61_v4  ;;  %v107_v6 = vsel %vm60_vm0, %v57_v1, 0.0  ;;  %v64_v7 = vsel %vm60_vm0, %v55_v5, 0.0  ;;  %v230_v28 = vld [vmem:[%s6132_s5 + $0x38] sm:$0xff]  ;;  %v229_v29 = vld [vmem:[%s6132_s5 + $0x30] sm:$0xff] }
   0xb   :  { %v141_v30 = vld [vmem:[%s6131_s4 + $0x38] sm:$0xff]  ;;  %4787 = vmatprep.subr.mxu1 %v230_v28  ;;  %v140_v31 = vld [vmem:[%s6131_s4 + $0x30] sm:$0xff]  ;;  %v228_v32 = vld [vmem:[%s6132_s5 + $0x28] sm:$0xff]  ;;  %vm5178_vm1 = vmmov 0   ;;  %vm320_vm2 = vcmask 64512   ;;  %s5181_s18 = smov 112  }
   0xc   :  { %4768 = vmatprep.subr.mxu0 %v141_v30  ;;  %4788 = vmatpush3.msra.mxu1 %v230_v28  ;;  %v139_v33 = vld [vmem:[%s6131_s4 + $0x28] sm:$0xff]  ;;  %v227_v34 = vld [vmem:[%s6132_s5 + $0x20] sm:$0xff]  ;;  %v226_v36 = vld [vmem:[%s6132_s5 + $0x18] sm:$0xff]  ;;  %s5182_s19 = smov 96   ;;  %s5183_s20 = smov 88  }
   0xd   :  { %4769 = vmatpush3.msra.mxu0 %v141_v30  ;;  %4789 = vmatprep.subr.mxu1 %v229_v29  ;;  %v138_v35 = vld [vmem:[%s6131_s4 + $0x20] sm:$0xff]  ;;  %v137_v37 = vld [vmem:[%s6131_s4 + $0x18] sm:$0xff]  ;;  %v225_v38 = vld [vmem:[%s6132_s5 + $0x10] sm:$0xff]  ;;  %s5184_s21 = smov 80   ;;  %s5185_s22 = smov 72  }
   0xe   :  { %108 = vadd.xlane.f32.xlu0 %v107_v6  ;;  %65 = vadd.xlane.f32.xlu1 %v64_v7  ;;  %v224_v39 = vld [vmem:[%s6132_s5 + $0x8] sm:$0xff]  ;;  %v136_v40 = vld [vmem:[%s6131_s4 + $0x10] sm:$0xff]  ;;  %v223_v41 = vld [vmem:[%s6132_s5] sm:$0xff]  ;;  %s5186_s23 = smov 56   ;;  %s5187_s24 = smov 48  }
   0xf   :  { %4770 = vmatprep.subr.mxu0 %v140_v31  ;;  %4790 = vmatpush3.msra.mxu1 %v229_v29  ;;  %v135_v42 = vld [vmem:[%s6131_s4 + $0x8] sm:$0xff]  ;;  %v134_v43 = vld [vmem:[%s6131_s4] sm:$0xff]  ;;  %s5188_s25 = smov 32   ;;  %s5189_s26 = smov 24  }
  0x10   :  { %4771 = vmatpush3.msra.mxu0 %v140_v31  ;;  %4791 = vmatprep.subr.mxu1 %v228_v32  ;;  %v4538_v57 = vld [vmem:[%s6129_s2] ss:$0 sm:$0xff]  ;;  %s5179_s2 = smov 120   ;;  %s5190_s28 = smov 16  }
  0x11   :  { %4772 = vmatprep.subr.mxu0 %v139_v33  ;;  %4792 = vmatpush3.msra.mxu1 %v228_v32  ;;  %v4539_v59 = vld [vmem:[%s6130_s3] ss:$0 sm:$0xff]  ;;  %s5180_s3 = smov 104   ;;  %s5191_s29 = smov 8  }
  0x12   :  { %4773 = vmatpush3.msra.mxu0 %v139_v33  ;;  %4793 = vmatprep.subr.mxu1 %v227_v34  ;;  %s5192_s1 = smov 64   ;;  %s5193_s30 = smov 40  }
  0x13   :  { %4774 = vmatprep.subr.mxu0 %v138_v35  ;;  %4794 = vmatpush3.msra.mxu1 %v227_v34 }
  0x14   :  { %4775 = vmatpush3.msra.mxu0 %v138_v35  ;;  %4795 = vmatprep.subr.mxu1 %v226_v36 }
  0x15   :  { %4776 = vmatprep.subr.mxu0 %v137_v37  ;;  %4796 = vmatpush3.msra.mxu1 %v226_v36 }
  0x16   :  { %4777 = vmatpush3.msra.mxu0 %v137_v37  ;;  %4797 = vmatprep.subr.mxu1 %v225_v38 }
  0x17   :  { %4798 = vmatpush3.msra.mxu1 %v225_v38  ;;  %4778 = vmatprep.subr.mxu0 %v136_v40 }
  0x18   :  { %4799 = vmatprep.subr.mxu1 %v224_v39  ;;  %4779 = vmatpush3.msra.mxu0 %v136_v40 }
  0x19   :  { %4800 = vmatpush3.msra.mxu1 %v224_v39  ;;  %4780 = vmatprep.subr.mxu0 %v135_v42 }
  0x1a   :  { %4801 = vmatprep.subr.mxu1 %v223_v41  ;;  %4781 = vmatpush3.msra.mxu0 %v135_v42 }
  0x1b   :  { %4802 = vmatpush3.msra.mxu1 %v223_v41  ;;  %4782 = vmatprep.subr.mxu0 %v134_v43 }
  0x1c   :  { %4783 = vmatpush3.msra.mxu0 %v134_v43 }
  0x93   :  { %v106_v8 = vpop.xlane.xlu0 %105  ;;  %v63_v9 = vpop.xlane.xlu1 %62 }
  0x94   :  { %v110_v10 = vmul.f32 0.015625, %v106_v8  ;;  %v68_v11 = vmul.f32 0.015625, %v63_v9 }
  0x96   :  { %v5297_v12 = vsub.f32 %v56_v0, %v110_v10  ;;  %v5299_v13 = vsub.f32 %v54_v2, %v68_v11  ;;  %v5177_v10 = vmov 0.0  }
  0x97   :  { %v109_v14 = vpop.xlane.xlu0 %108  ;;  %v66_v15 = vpop.xlane.xlu1 %65  ;;  %4806 = vmatprep.subr.mxu0 %v5177_v10  ;;  %4831 = vmatprep.subr.mxu1 %v5177_v10 }
  0x98   :  { %v111_v16 = vmul.f32 0.015625, %v109_v14  ;;  %v114_v17 = vmul.f32 %v5297_v12, %v5297_v12  ;;  %v69_v18 = vmul.f32 0.015625, %v66_v15  ;;  %v72_v19 = vmul.f32 %v5299_v13, %v5299_v13 }
  0x9a   :  { %v5305_v20 = vsub.f32 %v57_v1, %v111_v16  ;;  %v116_v21 = vsel %vm60_vm0, %v114_v17, 0.0  ;;  %v5308_v22 = vsub.f32 %v55_v5, %v69_v18  ;;  %v74_v24 = vsel %vm60_vm0, %v72_v19, 0.0 }
  0x9b   :  { %117 = vadd.xlane.f32.xlu0 %v116_v21 }
  0x9c   :  { %v115_v23 = vmul.f32 %v5305_v20, %v5305_v20  ;;  %v73_v25 = vmul.f32 %v5308_v22, %v5308_v22 }
  0x9e   :  { %v119_v26 = vsel %vm60_vm0, %v115_v23, 0.0  ;;  %v77_v27 = vsel %vm60_vm0, %v73_v25, 0.0 }
  0x9f   :  { %120 = vadd.xlane.f32.xlu1 %v119_v26  ;;  %75 = vadd.xlane.f32.xlu0 %v74_v24 }
  0xa3   :  { %78 = vadd.xlane.f32.xlu1 %v77_v27 }
 0x124   :  { %v118_v44 = vpop.xlane.xlu0 %117 }
 0x125   :  { %v122_v45 = vmul.f32 0.015625, %v118_v44 }
 0x127   :  { %v124_v46 = vadd.f32 1e-05, %v122_v45 }
 0x128   :  { %v76_v47 = vpop.xlane.xlu0 %75  ;;  %v121_v48 = vpop.xlane.xlu1 %120 }
 0x129   :  { %5065 = vrsqrt.f32 %v124_v46  ;;  %v80_v49 = vmul.f32 0.015625, %v76_v47  ;;  %v123_v50 = vmul.f32 0.015625, %v121_v48 }
 0x12b   :  { %v82_v51 = vadd.f32 1e-05, %v80_v49  ;;  %v125_v52 = vadd.f32 1e-05, %v123_v50 }
 0x12c   :  { %v79_v53 = vpop.xlane.xlu1 %78 }
 0x12d   :  { %5067 = vrsqrt.f32 %v82_v51  ;;  %v81_v54 = vmul.f32 0.015625, %v79_v53 }
 0x12e   :  { %5069 = vrsqrt.f32 %v125_v52 }
 0x12f   :  { %v83_v55 = vadd.f32 1e-05, %v81_v54 }
 0x131   :  { %5071 = vrsqrt.f32 %v83_v55 }
 0x136   :  { %v5066_v56 = vpop.eup %5065 }
 0x137   :  { %v128_v58 = vmul.f32 %v5066_v56, %v5297_v12 }
 0x139   :  { %v130_v60 = vmul.f32 %v4538_v57, %v128_v58 }
 0x13a   :  { %v5068_v61 = vpop.eup %5067 }
 0x13b   :  { %v5070_v62 = vpop.eup %5069  ;;  %v132_v63 = vadd.f32 %v4539_v59, %v130_v60  ;;  %v86_v0 = vmul.f32 %v5068_v61, %v5299_v13 }
 0x13c   :  { %v129_v1 = vmul.f32 %v5070_v62, %v5305_v20 }
 0x13d   :  { %4803 = vmatprep.mubr.msk.f32.mxu1 %vm60_vm0, %v132_v63  ;;  %v94_v2 = vmul.f32 %v4538_v57, %v86_v0 }
 0x13e   :  { %v5072_v3 = vpop.eup %5071  ;;  %v131_v4 = vmul.f32 %v4538_v57, %v129_v1 }
 0x13f   :  { %v102_v5 = vadd.f32 %v4539_v59, %v94_v2  ;;  %v87_v6 = vmul.f32 %v5072_v3, %v5308_v22 }
 0x140   :  { %v133_v7 = vadd.f32 %v4539_v59, %v131_v4 }
 0x141   :  { %4784 = vmatprep.mubr.msk.f32.mxu0 %vm60_vm0, %v102_v5  ;;  %v95_v8 = vmul.f32 %v4538_v57, %v87_v6 }
 0x142   :  { %4804 = vmatmul.mubr.msk.f32.vlgmr.msra.gmra.mxu1 %vm60_vm0, %v133_v7 }
 0x143   :  { %v103_v9 = vadd.f32 %v4539_v59, %v95_v8  ;;  %4833 = vmatprep.mubr.msk.f32.mxu1 %vm5178_vm1, %v5177_v10 }
 0x145   :  { %4785 = vmatmul.mubr.msk.f32.vlgmr.msra.gmra.mxu0 %vm60_vm0, %v103_v9 }
 0x146   :  { %4808 = vmatprep.mubr.msk.f32.mxu0 %vm5178_vm1, %v5177_v10 }
 0x202   :  { %v5385_v11 = vpop.f32.mrf.mxu1 }
 0x204   :  { %v5387_v12 = vpop.f32.mrf.mxu1 }
 0x205   :  { %399 = vrot.lane.b32.xlu0 %v5387_v12, %s5179_s2  ;;  %4807 = vmatpush3.xpose.msk.msra.mxu0 %vm320_vm2, %v5387_v12  ;;  %v5393_v13 = vpop.f32.mrf.mxu0 }
 0x206   :  { %4811 = vmatprep.subr.mxu0 %v5177_v10 }
 0x207   :  { %v214_v14 = vpop.f32.mrf.mxu0 }
 0x208   :  { %397 = vrot.lane.b32.xlu1 %v214_v14, %s5179_s2  ;;  %4809 = vmatmul.mubr.msk.f32.vlgmr.msra.gmra.mxu0 %vm320_vm2, %v214_v14 }
 0x209   :  { %555 = vrot.lane.b32.xlu0 %v5387_v12, %s5180_s3  ;;  %4813 = vmatprep.mubr.msk.f32.mxu0 %vm5178_vm1, %v5177_v10 }
 0x20c   :  { %477 = vrot.lane.b32.xlu1 %v5387_v12, %s5181_s18 }
 0x20d   :  { %633 = vrot.lane.b32.xlu0 %v5387_v12, %s5182_s19 }
 0x210   :  { %475 = vrot.lane.b32.xlu1 %v214_v14, %s5181_s18 }
 0x211   :  { %711 = vrot.lane.b32.xlu0 %v5387_v12, %s5183_s20 }
 0x214   :  { %553 = vrot.lane.b32.xlu1 %v214_v14, %s5180_s3 }
 0x215   :  { %789 = vrot.lane.b32.xlu0 %v5387_v12, %s5184_s21 }
 0x218   :  { %631 = vrot.lane.b32.xlu1 %v214_v14, %s5182_s19 }
 0x219   :  { %867 = vrot.lane.b32.xlu0 %v5387_v12, %s5185_s22 }
 0x21c   :  { %709 = vrot.lane.b32.xlu1 %v214_v14, %s5183_s20 }
 0x220   :  { %787 = vrot.lane.b32.xlu1 %v214_v14, %s5184_s21 }
 0x224   :  { %865 = vrot.lane.b32.xlu1 %v214_v14, %s5185_s22 }
 0x228   :  { %1019 = vrot.lane.b32.xlu1 %v5393_v13, %s5179_s2 }
 0x22c   :  { %1175 = vrot.lane.b32.xlu1 %v5393_v13, %s5180_s3 }
 0x230   :  { %1331 = vrot.lane.b32.xlu1 %v5393_v13, %s5183_s20 }
 0x277   :  { %v400_v15 = vpop.permute.xlu0 %399 }
 0x278   :  { %4812 = vmatpush3.xpose.msk.msra.mxu0 %vm320_vm2, %v400_v15 }
 0x279   :  { %4816 = vmatprep.subr.mxu0 %v5177_v10 }
 0x27a   :  { %v398_v16 = vpop.permute.xlu1 %397 }
 0x27b   :  { %v556_v17 = vpop.permute.xlu0 %555  ;;  %4814 = vmatmul.mubr.msk.f32.vlgmr.msra.gmra.mxu0 %vm320_vm2, %v398_v16 }
 0x27c   :  { %4818 = vmatprep.mubr.msk.f32.mxu0 %vm5178_vm1, %v5177_v10 }
 0x27e   :  { %v478_v18 = vpop.permute.xlu1 %477 }
 0x27f   :  { %v634_v19 = vpop.permute.xlu0 %633  ;;  %4817 = vmatpush3.xpose.msk.msra.mxu0 %vm320_vm2, %v478_v18 }
 0x280   :  { %4821 = vmatprep.subr.mxu0 %v5177_v10 }
 0x282   :  { %v476_v20 = vpop.permute.xlu1 %475 }
 0x283   :  { %v712_v21 = vpop.permute.xlu0 %711  ;;  %4819 = vmatmul.mubr.msk.f32.vlgmr.msra.gmra.mxu0 %vm320_vm2, %v476_v20 }
 0x284   :  { %4822 = vmatpush3.xpose.msk.msra.mxu0 %vm320_vm2, %v556_v17  ;;  %4832 = vmatpush3.xpose.msk.msra.mxu1 %vm320_vm2, %v712_v21 }
 0x285   :  { %4823 = vmatprep.mubr.msk.f32.mxu0 %vm5178_vm1, %v5177_v10  ;;  %4826 = vmatprep.subr.mxu0 %v5177_v10 }
 0x286   :  { %v554_v22 = vpop.permute.xlu1 %553  ;;  %4841 = vmatprep.subr.mxu1 %v5177_v10 }
 0x287   :  { %4824 = vmatmul.mubr.msk.f32.vlgmr.msra.gmra.mxu0 %vm320_vm2, %v554_v22  ;;  %v790_v23 = vpop.permute.xlu0 %789 }
 0x288   :  { %4827 = vmatpush3.xpose.msk.msra.mxu0 %vm320_vm2, %v634_v19  ;;  %4828 = vmatprep.mubr.msk.f32.mxu0 %vm5178_vm1, %v5177_v10 }
 0x289   :  { %4836 = vmatprep.subr.mxu0 %v5177_v10 }
 0x28a   :  { %v632_v24 = vpop.permute.xlu1 %631 }
 0x28b   :  { %4829 = vmatmul.mubr.msk.f32.vlgmr.msra.gmra.mxu0 %vm320_vm2, %v632_v24  ;;  %v868_v26 = vpop.permute.xlu0 %867 }
 0x28c   :  { %4837 = vmatpush3.xpose.msk.msra.mxu0 %vm320_vm2, %v790_v23  ;;  %4838 = vmatprep.mubr.msk.f32.mxu0 %vm5178_vm1, %v5177_v10 }
 0x28d   :  { %4846 = vmatprep.subr.mxu0 %v5177_v10 }
 0x28e   :  { %v710_v25 = vpop.permute.xlu1 %709 }
 0x28f   :  { %4834 = vmatmul.mubr.msk.f32.vlgmr.msra.gmra.mxu1 %vm320_vm2, %v710_v25 }
 0x290   :  { %4842 = vmatpush3.xpose.msk.msra.mxu1 %vm320_vm2, %v868_v26  ;;  %4843 = vmatprep.mubr.msk.f32.mxu1 %vm5178_vm1, %v5177_v10 }
 0x291   :  { %4851 = vmatprep.subr.mxu1 %v5177_v10 }
 0x292   :  { %v788_v27 = vpop.permute.xlu1 %787 }
 0x293   :  { %4839 = vmatmul.mubr.msk.f32.vlgmr.msra.gmra.mxu0 %vm320_vm2, %v788_v27 }
 0x294   :  { %4847 = vmatpush3.xpose.msk.msra.mxu0 %vm320_vm2, %v5385_v11  ;;  %4848 = vmatprep.mubr.msk.f32.mxu0 %vm5178_vm1, %v5177_v10 }
 0x295   :  { %4856 = vmatprep.subr.mxu0 %v5177_v10 }
 0x296   :  { %v866_v28 = vpop.permute.xlu1 %865 }
 0x297   :  { %4844 = vmatmul.mubr.msk.f32.vlgmr.msra.gmra.mxu1 %vm320_vm2, %v866_v28  ;;  %4849 = vmatmul.mubr.msk.f32.vlgmr.msra.gmra.mxu0 %vm320_vm2, %v5393_v13 }
 0x298   :  { %4853 = vmatprep.mubr.msk.f32.mxu1 %vm5178_vm1, %v5177_v10  ;;  %4858 = vmatprep.mubr.msk.f32.mxu0 %vm5178_vm1, %v5177_v10 }
 0x29a   :  { %v1020_v59 = vpop.permute.xlu1 %1019 }
 0x29e   :  { %v1176_v63 = vpop.permute.xlu1 %1175 }
 0x2a2   :  { %v1332_v1 = vpop.permute.xlu1 %1331 }
 0x2c8   :  { %v5466_v29 = vpop.f32.mrf.mxu0 }
 0x2c9   :  { %v1565_v5 = vmul.f32 0.35355338, %v5466_v29 }
 0x2ca   :  { %v4810_v30 = vpop.f32.mrf.mxu0 }
 0x2cb   :  { %v1581_v7 = vsel %vm320_vm2, %v1565_v5, -inf }
 0x33b   :  { %v471_v31 = vpop.f32.mrf.mxu0 }
 0x33c   :  { %v1566_v32 = vmul.f32 0.35355338, %v471_v31 }
 0x33d   :  { %v4815_v33 = vpop.f32.mrf.mxu0 }
 0x33e   :  { %v1584_v34 = vsel %vm320_vm2, %v1566_v32, -inf }
 0x33f   :  { %1585 = vmax.xlane.f32.xlu0 %v1584_v34 }
 0x343   :  { %v549_v35 = vpop.f32.mrf.mxu0 }
 0x344   :  { %v1567_v49 = vmul.f32 0.35355338, %v549_v35 }
 0x345   :  { %v4820_v36 = vpop.f32.mrf.mxu0 }
 0x346   :  { %v1587_v51 = vsel %vm320_vm2, %v1567_v49, -inf }
 0x347   :  { %v627_v37 = vpop.f32.mrf.mxu0 }
 0x348   :  { %v5481_v50 = vmul.f32 0.35355338, %v627_v37 }
 0x349   :  { %v4825_v38 = vpop.f32.mrf.mxu0 }
 0x34a   :  { %v1590_v53 = vsel %vm320_vm2, %v5481_v50, -inf }
 0x34b   :  { %v705_v39 = vpop.f32.mrf.mxu0 }
 0x34c   :  { %v5484_v52 = vmul.f32 0.35355338, %v705_v39 }
 0x34d   :  { %v4830_v40 = vpop.f32.mrf.mxu0 }
 0x34e   :  { %v1593_v55 = vsel %vm320_vm2, %v5484_v52, -inf }
 0x34f   :  { %v783_v41 = vpop.f32.mrf.mxu1 }
 0x350   :  { %v5515_v6 = vmul.f32 0.35355338, %v783_v41 }
 0x351   :  { %v4835_v42 = vpop.f32.mrf.mxu1 }
 0x352   :  { %v1596_v9 = vsel %vm320_vm2, %v5515_v6, -inf }
 0x353   :  { %v861_v43 = vpop.f32.mrf.mxu0 }
 0x354   :  { %v5488_v54 = vmul.f32 0.35355338, %v861_v43 }
 0x355   :  { %1021 = vrot.lane.b32.xlu0 %v5385_v11, %s5179_s2  ;;  %v4840_v44 = vpop.f32.mrf.mxu0 }
 0x356   :  { %v1599_v56 = vsel %vm320_vm2, %v5488_v54, -inf }
 0x357   :  { %v939_v45 = vpop.f32.mrf.mxu1  ;;  %v5471_v46 = vpop.f32.mrf.mxu0 }
 0x358   :  { %v5518_v8 = vmul.f32 0.35355338, %v939_v45 }
 0x359   :  { %v4845_v47 = vpop.f32.mrf.mxu1  ;;  %1177 = vrot.lane.b32.xlu0 %v5385_v11, %s5180_s3  ;;  %v4850_v48 = vpop.f32.mrf.mxu0 }
 0x35a   :  { %v1602_v14 = vsel %vm320_vm2, %v5518_v8, -inf }
 0x35d   :  { %1333 = vrot.lane.b32.xlu0 %v5385_v11, %s5183_s20 }
 0x361   :  { %1489 = vrot.lane.b32.xlu0 %v5385_v11, %s5185_s22 }
 0x365   :  { %1833 = vrot.lane.b32.xlu0 %v5387_v12, %s5186_s23 }
 0x384   :  { %1588 = vmax.xlane.f32.xlu0 %v1587_v51 }
 0x388   :  { %1591 = vmax.xlane.f32.xlu0 %v1590_v53  ;;  %v5576_v53 = vmul.f32 0.35355338, %v5471_v46 }
 0x38c   :  { %1594 = vmax.xlane.f32.xlu0 %v1593_v55  ;;  %v1605_v55 = vsel %vm320_vm2, %v5576_v53, -inf }
 0x390   :  { %1600 = vmax.xlane.f32.xlu0 %v1599_v56 }
 0x3c8   :  { %v1586_v57 = vpop.xlane.xlu0 %1585 }
 0x3c9   :  { %v1630_v58 = vsub.f32 %v1566_v32, %v1586_v57 }
 0x3cb   :  { %v1647_v60 = vmul.f32 1.442695, %v1630_v58 }
 0x3cc   :  { %v1022_v61 = vpop.permute.xlu0 %1021 }
 0x3cd   :  { %5073 = vpow2.f32 %v1647_v60  ;;  %4852 = vmatpush3.xpose.msk.msra.mxu1 %vm320_vm2, %v1022_v61 }
 0x3ce   :  { %4861 = vmatprep.subr.mxu1 %v5177_v10 }
 0x3d0   :  { %4854 = vmatmul.mubr.msk.f32.vlgmr.msra.gmra.mxu1 %vm320_vm2, %v1020_v59  ;;  %v1178_v62 = vpop.permute.xlu0 %1177 }
 0x3d1   :  { %4862 = vmatpush3.xpose.msk.msra.mxu1 %vm320_vm2, %v1178_v62  ;;  %4863 = vmatprep.mubr.msk.f32.mxu1 %vm5178_vm1, %v5177_v10 }
 0x3d2   :  { %4871 = vmatprep.subr.mxu1 %v5177_v10 }
 0x3d4   :  { %4864 = vmatmul.mubr.msk.f32.vlgmr.msra.gmra.mxu1 %vm320_vm2, %v1176_v63  ;;  %v1334_v0 = vpop.permute.xlu0 %1333 }
 0x3d5   :  { %4872 = vmatpush3.xpose.msk.msra.mxu1 %vm320_vm2, %v1334_v0  ;;  %4873 = vmatprep.mubr.msk.f32.mxu1 %vm5178_vm1, %v5177_v10 }
 0x3d6   :  { %4881 = vmatprep.subr.mxu1 %v5177_v10 }
 0x3d8   :  { %4874 = vmatmul.mubr.msk.f32.vlgmr.msra.gmra.mxu1 %vm320_vm2, %v1332_v1  ;;  %v1490_v2 = vpop.permute.xlu0 %1489 }
 0x3d9   :  { %4882 = vmatpush3.xpose.msk.msra.mxu1 %vm320_vm2, %v1490_v2  ;;  %4883 = vmatprep.mubr.msk.f32.mxu1 %vm5178_vm1, %v5177_v10 }
 0x3da   :  { %v5074_v3 = vpop.eup %5073  ;;  %4891 = vmatprep.subr.mxu1 %v5177_v10 }
 0x3db   :  { %v1680_v4 = vsel %vm320_vm2, %v5074_v3, 0.0 }
 0x3dc   :  { %1681 = vadd.xlane.f32.xlu1 %v1680_v4  ;;  %v1834_v15 = vpop.permute.xlu0 %1833 }
 0x3ed   :  { %1487 = vrot.lane.b32.xlu1 %v5393_v13, %s5185_s22  ;;  %s5194_s22 = smov [#allocation2]  }
 0x40d   :  { %v1589_v16 = vpop.xlane.xlu0 %1588 }
 0x40e   :  { %v1631_v17 = vsub.f32 %v1567_v49, %v1589_v16 }
 0x410   :  { %v1649_v18 = vmul.f32 1.442695, %v1631_v17 }
 0x411   :  { %1582 = vmax.xlane.f32.xlu1 %v1581_v7  ;;  %v1592_v23 = vpop.xlane.xlu0 %1591 }
 0x412   :  { %5075 = vpow2.f32 %v1649_v18  ;;  %v1632_v58 = vsub.f32 %v5481_v50, %v1592_v23 }
 0x414   :  { %v1651_v60 = vmul.f32 1.442695, %v1632_v58 }
 0x415   :  { %1597 = vmax.xlane.f32.xlu1 %v1596_v9  ;;  %v1595_v26 = vpop.xlane.xlu0 %1594 }
 0x416   :  { %v1633_v27 = vsub.f32 %v5484_v52, %v1595_v26 }
 0x418   :  { %v1653_v29 = vmul.f32 1.442695, %v1633_v27 }
 0x419   :  { %1603 = vmax.xlane.f32.xlu1 %v1602_v14  ;;  %v1601_v28 = vpop.xlane.xlu0 %1600 }
 0x41a   :  { %v1635_v30 = vsub.f32 %v5488_v54, %v1601_v28 }
 0x41c   :  { %v1657_v31 = vmul.f32 1.442695, %v1635_v30 }
 0x41f   :  { %v5530_v19 = vpop.eup %5075 }
 0x420   :  { %v1683_v20 = vsel %vm320_vm2, %v5530_v19, 0.0 }
 0x42a   :  { %1099 = vrot.lane.b32.xlu1 %v5385_v11, %s5181_s18 }
 0x42e   :  { %1411 = vrot.lane.b32.xlu1 %v5385_v11, %s5184_s21 }
 0x432   :  { %2055 = vrot.lane.b32.xlu1 %v5387_v12, %s5187_s24 }
 0x456   :  { %1684 = vadd.xlane.f32.xlu1 %v1683_v20 }
 0x465   :  { %v1682_v21 = vpop.xlane.xlu1 %1681 }
 0x466   :  { %5077 = vrcp.f32 %v1682_v21 }
 0x467   :  { %2355 = vrot.lane.b32.xlu1 %v5387_v12, %s5188_s25  ;;  %5079 = vpow2.f32 %v1653_v29 }
 0x468   :  { %5081 = vpow2.f32 %v1657_v31 }
 0x469   :  { %v1488_v22 = vpop.permute.xlu1 %1487 }
 0x46a   :  { %4884 = vmatmul.mubr.msk.f32.vlgmr.msra.gmra.mxu1 %vm320_vm2, %v1488_v22 }
 0x46b   :  { %4892 = vmatpush3.msra.mxu1 %v1834_v15  ;;  %2505 = vrot.lane.b32.xlu1 %v5387_v12, %s5189_s26 }
 0x46c   :  { %4893 = vmatprep.mubr.msk.f32.mxu1 %vm5178_vm1, %v5177_v10  ;;  %4901 = vmatprep.subr.mxu1 %v5177_v10 }
 0x46f   :  { %2655 = vrot.lane.b32.xlu1 %v5387_v12, %s5190_s28 }
 0x473   :  { %v5078_v24 = vpop.eup %5077 }
 0x474   :  { %v1742_v25 = vmul.f32 %v5078_v24, %v5074_v3  ;;  %v5549_v32 = vpop.eup %5079 }
 0x475   :  { %v1689_v35 = vsel %vm320_vm2, %v5549_v32, 0.0  ;;  %v5553_v36 = vpop.eup %5081 }
 0x476   :  { %4894 = vmatmul.mubr.msk.f32.vlgmr.msra.gmra.mxu1 %vm320_vm2, %v1742_v25  ;;  %v1695_v39 = vsel %vm320_vm2, %v5553_v36, 0.0  ;;  %v5630_v25 = vld [vmem:[%s6133_s6 + $0x8] sm:$0xff] }
 0x477   :  { %4903 = vmatprep.mubr.msk.f32.mxu1 %vm5178_vm1, %v5177_v10 }
 0x490   :  { %v1093_v33 = vpop.f32.mrf.mxu1 }
 0x491   :  { %v5571_v52 = vmul.f32 0.35355338, %v1093_v33 }
 0x492   :  { %v4855_v34 = vpop.f32.mrf.mxu1 }
 0x493   :  { %1690 = vadd.xlane.f32.xlu1 %v1689_v35  ;;  %v1608_v54 = vsel %vm320_vm2, %v5571_v52, -inf }
 0x494   :  { %v5555_v37 = vpop.f32.mrf.mxu1 }
 0x496   :  { %v4865_v38 = vpop.f32.mrf.mxu1 }
 0x497   :  { %1696 = vadd.xlane.f32.xlu1 %v1695_v39 }
 0x498   :  { %v5559_v40 = vpop.f32.mrf.mxu1 }
 0x49a   :  { %v1583_v41 = vpop.xlane.xlu1 %1582  ;;  %v4875_v42 = vpop.f32.mrf.mxu1 }
 0x49b   :  { %v1629_v43 = vsub.f32 %v1565_v5, %v1583_v41  ;;  %v5657_v41 = vld [vmem:[%s6133_s6] sm:$0xff] }
 0x49c   :  { %4902 = vmatpush3.msra.mxu1 %v5657_v41 }
 0x49d   :  { %v1645_v44 = vmul.f32 1.442695, %v1629_v43  ;;  %4911 = vmatprep.subr.mxu1 %v5177_v10 }
 0x49e   :  { %v1598_v45 = vpop.xlane.xlu1 %1597 }
 0x49f   :  { %5083 = vpow2.f32 %v1645_v44  ;;  %v1634_v46 = vsub.f32 %v5515_v6, %v1598_v45 }
 0x4a1   :  { %v1655_v56 = vmul.f32 1.442695, %v1634_v46 }
 0x4a2   :  { %v1604_v47 = vpop.xlane.xlu1 %1603 }
 0x4a3   :  { %v1636_v57 = vsub.f32 %v5518_v8, %v1604_v47  ;;  %5085 = vpow2.f32 %v1655_v56 }
 0x4a5   :  { %v1659_v59 = vmul.f32 1.442695, %v1636_v57  ;;  %v5698_v57 = vmul.f32 0.35355338, %v5555_v37 }
 0x4a6   :  { %v1100_v48 = vpop.permute.xlu1 %1099 }
 0x4a7   :  { %4857 = vmatpush3.xpose.msk.msra.mxu0 %vm320_vm2, %v1100_v48  ;;  %5087 = vpow2.f32 %v1659_v59  ;;  %v1614_v59 = vsel %vm320_vm2, %v5698_v57, -inf }
 0x4a8   :  { %2805 = vrot.lane.b32.xlu1 %v5387_v12, %s5191_s29  ;;  %4866 = vmatprep.subr.mxu0 %v5177_v10  ;;  %5089 = vpow2.f32 %v1651_v60 }
 0x4aa   :  { %v1412_v1 = vpop.permute.xlu1 %1411 }
 0x4ac   :  { %v5565_v49 = vpop.eup %5083 }
 0x4ad   :  { %v1677_v51 = vsel %vm320_vm2, %v5565_v49, 0.0 }
 0x4ae   :  { %1678 = vadd.xlane.f32.xlu0 %v1677_v51  ;;  %v2056_v3 = vpop.permute.xlu1 %2055 }
 0x4b0   :  { %v5591_v61 = vpop.eup %5085 }
 0x4b4   :  { %v5595_v62 = vpop.eup %5087 }
 0x4b5   :  { %v1698_v63 = vsel %vm320_vm2, %v5595_v62, 0.0  ;;  %v5599_v0 = vpop.eup %5089 }
 0x4b6   :  { %v1686_v50 = vsel %vm320_vm2, %v5599_v0, 0.0 }
 0x4c4   :  { %1097 = vrot.lane.b32.xlu0 %v5393_v13, %s5181_s18 }
 0x4c8   :  { %1255 = vrot.lane.b32.xlu0 %v5385_v11, %s5182_s19 }
 0x4cc   :  { %1253 = vrot.lane.b32.xlu0 %v5393_v13, %s5182_s19  ;;  %1609 = vmax.xlane.f32.xlu1 %v1608_v54 }
 0x4d0   :  { %1409 = vrot.lane.b32.xlu0 %v5393_v13, %s5184_s21  ;;  %1606 = vmax.xlane.f32.xlu1 %v1605_v55  ;;  %v1692_v13 = vsel %vm320_vm2, %v5591_v61, 0.0 }
 0x4d4   :  { %1757 = vrot.lane.b32.xlu0 %v5387_v12, %s5192_s1 }
 0x4df   :  { %v1685_v5 = vpop.xlane.xlu1 %1684 }
 0x4e3   :  { %v5607_v6 = vpop.permute.xlu1 %2355 }
 0x4e7   :  { %v5609_v14 = vpop.permute.xlu1 %2505 }
 0x4eb   :  { %v5615_v16 = vpop.permute.xlu1 %2655 }
 0x4f3   :  { %1693 = vadd.xlane.f32.xlu0 %v1692_v13 }
 0x4f7   :  { %1699 = vadd.xlane.f32.xlu0 %v1698_v63 }
 0x4fb   :  { %1687 = vadd.xlane.f32.xlu0 %v1686_v50 }
 0x511   :  { %2205 = vrot.lane.b32.xlu0 %v5387_v12, %s5193_s30 }
 0x51c   :  { %v1691_v18 = vpop.xlane.xlu1 %1690 }
 0x520   :  { %v1697_v22 = vpop.xlane.xlu1 %1696 }
 0x524   :  { %v2806_v27 = vpop.permute.xlu1 %2805 }
 0x52a   :  { %v5605_v2 = vpop.f32.mrf.mxu1 }
 0x52b   :  { %v5669_v48 = vmul.f32 0.35355338, %v5605_v2  ;;  %v5718_v2 = vld [vmem:[%s6133_s6 + $0x10] sm:$0xff] }
 0x52c   :  { %v4885_v4 = vpop.f32.mrf.mxu1 }
 0x536   :  { %v1905_v7 = vpop.f32.mrf.mxu1 }
 0x537   :  { %v1679_v8 = vpop.xlane.xlu0 %1678 }
 0x538   :  { %v4895_v9 = vpop.f32.mrf.mxu1  ;;  %5091 = vrcp.f32 %v1679_v8 }
 0x539   :  { %5093 = vrcp.f32 %v1685_v5 }
 0x53b   :  { %v1098_v15 = vpop.permute.xlu0 %1097 }
 0x53c   :  { %4859 = vmatmul.mubr.msk.f32.vlgmr.msra.gmra.mxu0 %vm320_vm2, %v1098_v15 }
 0x53d   :  { %4868 = vmatprep.mubr.msk.f32.mxu0 %vm5178_vm1, %v5177_v10 }
 0x53f   :  { %v1256_v12 = vpop.permute.xlu0 %1255 }
 0x540   :  { %4867 = vmatpush3.xpose.msk.msra.mxu0 %vm320_vm2, %v1256_v12 }
 0x541   :  { %4876 = vmatprep.subr.mxu0 %v5177_v10 }
 0x543   :  { %v1254_v17 = vpop.permute.xlu0 %1253 }
 0x544   :  { %4869 = vmatmul.mubr.msk.f32.vlgmr.msra.gmra.mxu0 %vm320_vm2, %v1254_v17 }
 0x545   :  { %4877 = vmatpush3.xpose.msk.msra.mxu0 %vm320_vm2, %v1412_v1  ;;  %4878 = vmatprep.mubr.msk.f32.mxu0 %vm5178_vm1, %v5177_v10  ;;  %v5092_v21 = vpop.eup %5091 }
 0x546   :  { %4886 = vmatprep.subr.mxu0 %v5177_v10  ;;  %v1741_v24 = vmul.f32 %v5092_v21, %v5565_v49  ;;  %v5094_v26 = vpop.eup %5093  ;;  %v5749_v21 = vld [vmem:[%s6133_s6 + $0x20] sm:$0xff] }
 0x547   :  { %v1410_v20 = vpop.permute.xlu0 %1409  ;;  %v1743_v28 = vmul.f32 %v5094_v26, %v5530_v19 }
 0x548   :  { %4879 = vmatmul.mubr.msk.f32.vlgmr.msra.gmra.mxu0 %vm320_vm2, %v1410_v20 }
 0x549   :  { %4888 = vmatprep.mubr.msk.f32.mxu0 %vm5178_vm1, %v5177_v10 }
 0x54b   :  { %v1758_v23 = vpop.permute.xlu0 %1757 }
 0x54c   :  { %4887 = vmatpush3.msra.mxu0 %v1758_v23 }
 0x54d   :  { %4889 = vmatmul.mubr.msk.f32.vlgmr.msra.gmra.mxu0 %vm320_vm2, %v1741_v24  ;;  %4896 = vmatprep.subr.mxu0 %v5177_v10  ;;  %v5759_v24 = vld [vmem:[%s6133_s6 + $0x28] sm:$0xff] }
 0x54e   :  { %4897 = vmatpush3.msra.mxu0 %v5630_v25  ;;  %4898 = vmatprep.mubr.msk.f32.mxu0 %vm5178_vm1, %v5177_v10 }
 0x54f   :  { %4906 = vmatprep.subr.mxu0 %v5177_v10 }
 0x551   :  { %4899 = vmatmul.mubr.msk.f32.vlgmr.msra.gmra.mxu0 %vm320_vm2, %v1905_v7  ;;  %v5732_v7 = vld [vmem:[%s6133_s6 + $0x18] sm:$0xff] }
 0x552   :  { %4907 = vmatpush3.msra.mxu0 %v2056_v3  ;;  %4908 = vmatprep.mubr.msk.f32.mxu0 %vm5178_vm1, %v5177_v10 }
 0x553   :  { %4916 = vmatprep.subr.mxu0 %v5177_v10 }
 0x555   :  { %v1610_v29 = vpop.xlane.xlu1 %1609  ;;  %4909 = vmatmul.mubr.msk.f32.vlgmr.msra.gmra.mxu0 %vm320_vm2, %v1743_v28  ;;  %v5769_v28 = vld [vmem:[%s6133_s6 + $0x30] sm:$0xff] }
 0x556   :  { %v1638_v30 = vsub.f32 %v5571_v52, %v1610_v29  ;;  %4918 = vmatprep.mubr.msk.f32.mxu0 %vm5178_vm1, %v5177_v10 }
 0x558   :  { %v1663_v31 = vmul.f32 1.442695, %v1638_v30 }
 0x55a   :  { %5095 = vpow2.f32 %v1663_v31  ;;  %v5779_v31 = vld [vmem:[%s6133_s6 + $0x38] sm:$0xff] }
 0x567   :  { %v5647_v33 = vpop.eup %5095 }
 0x568   :  { %v1704_v34 = vsel %vm320_vm2, %v5647_v33, 0.0 }
 0x569   :  { %1705 = vadd.xlane.f32.xlu0 %v1704_v34 }
 0x57c   :  { %v1694_v35 = vpop.xlane.xlu0 %1693 }
 0x57f   :  { %3031 = vrot.lane.b32.xlu0 %v5385_v11, %s5186_s23  ;;  %s4527_s23 = sshll.u32 %s5194_s22, 4  ;;  %s4528_s23 = int_to_ptr.vmem [resolvable:$true] %s4527_s23 }
 0x580   :  { %v1700_v19 = vpop.xlane.xlu0 %1699  ;;  %p5160_p1 = scmp.lt.s32.totalorder %s4528_s23, %s4528_s23 }
 0x584   :  { %v1688_v38 = vpop.xlane.xlu0 %1687 }
 0x585   :  { %5097 = vrcp.f32 %v1688_v38 }
 0x586   :  { %5099 = vrcp.f32 %v1691_v18 }
 0x587   :  { %5101 = vrcp.f32 %v1694_v35 }
 0x588   :  { %v2206_v39 = vpop.permute.xlu0 %2205  ;;  %5103 = vrcp.f32 %v1697_v22 }
 0x589   :  { %4917 = vmatpush3.msra.mxu0 %v2206_v39  ;;  %5105 = vrcp.f32 %v1700_v19 }
 0x58a   :  { %4926 = vmatprep.subr.mxu0 %v5177_v10 }
 0x592   :  { %v5098_v42 = vpop.eup %5097 }
 0x593   :  { %v1744_v43 = vmul.f32 %v5098_v42, %v5599_v0  ;;  %v5100_v44 = vpop.eup %5099 }
 0x594   :  { %v1745_v45 = vmul.f32 %v5100_v44, %v5549_v32  ;;  %v5102_v47 = vpop.eup %5101  ;;  %v1626_v32 = vsel %vm320_vm2, %v5669_v48, -inf }
 0x595   :  { %4919 = vmatmul.mubr.msk.f32.vlgmr.msra.gmra.mxu0 %vm320_vm2, %v1744_v43  ;;  %v1746_v49 = vmul.f32 %v5102_v47, %v5591_v61  ;;  %v5104_v51 = vpop.eup %5103  ;;  %v1607_v43 = vpop.xlane.xlu1 %1606 }
 0x596   :  { %4927 = vmatpush3.msra.mxu0 %v5607_v6  ;;  %4928 = vmatprep.mubr.msk.f32.mxu0 %vm5178_vm1, %v5177_v10  ;;  %v1747_v52 = vmul.f32 %v5104_v51, %v5553_v36  ;;  %v5106_v54 = vpop.eup %5105 }
 0x597   :  { %4936 = vmatprep.subr.mxu0 %v5177_v10  ;;  %v1748_v55 = vmul.f32 %v5106_v54, %v5595_v62  ;;  %v5707_v62 = vmul.f32 0.35355338, %v5559_v40 }
 0x599   :  { %4929 = vmatmul.mubr.msk.f32.vlgmr.msra.gmra.mxu0 %vm320_vm2, %v1745_v45  ;;  %v1620_v1 = vsel %vm320_vm2, %v5707_v62, -inf }
 0x59a   :  { %4937 = vmatpush3.msra.mxu0 %v5609_v14  ;;  %4938 = vmatprep.mubr.msk.f32.mxu0 %vm5178_vm1, %v5177_v10 }
 0x59b   :  { %4946 = vmatprep.subr.mxu0 %v5177_v10 }
 0x59d   :  { %4939 = vmatmul.mubr.msk.f32.vlgmr.msra.gmra.mxu0 %vm320_vm2, %v1746_v49 }
 0x59e   :  { %4947 = vmatpush3.msra.mxu0 %v5615_v16  ;;  %1627 = vmax.xlane.f32.xlu0 %v1626_v32 }
 0x59f   :  { %4948 = vmatprep.mubr.msk.f32.mxu0 %vm5178_vm1, %v5177_v10  ;;  %4956 = vmatprep.subr.mxu0 %v5177_v10 }
 0x5a1   :  { %4949 = vmatmul.mubr.msk.f32.vlgmr.msra.gmra.mxu0 %vm320_vm2, %v1747_v52  ;;  %v1637_v52 = vsub.f32 %v5576_v53, %v1607_v43 }
 0x5a2   :  { %4957 = vmatpush3.msra.mxu0 %v2806_v27  ;;  %4958 = vmatprep.mubr.msk.f32.mxu0 %vm5178_vm1, %v5177_v10 }
 0x5a3   :  { %4966 = vmatprep.subr.mxu0 %v5177_v10 }
 0x5a5   :  { %4959 = vmatmul.mubr.msk.f32.vlgmr.msra.gmra.mxu0 %vm320_vm2, %v1748_v55  ;;  %v1661_v55 = vmul.f32 1.442695, %v1637_v52 }
 0x5a6   :  { %4968 = vmatprep.mubr.msk.f32.mxu0 %vm5178_vm1, %v5177_v10 }
 0x5b4   :  { %3253 = vrot.lane.b32.xlu0 %v5385_v11, %s5187_s24  ;;  %s5155_s24 = scalar_lea.vmem %s4528_s23, 256 }
 0x5b5   :  { %p5156_p0 = scmp.ne.s32.totalorder %s4528_s23, %s5155_s24  ;;  %p5161_p2 = scmp.lt.s32.totalorder %s5155_s24, %s5155_s24 }
 0x5b7   :  { %p5162_p3 = por %p5161_p2, %p5160_p1 }
 0x5b9   :  { %p5163_p4 = pnand %p5162_p3, %p5156_p0 }
 0x5f2   :  { %v1706_v14 = vpop.xlane.xlu0 %1705 }
 0x5f6   :  { %v3032_v15 = vpop.permute.xlu0 %3031 }
 0x5fc   :  { %v1171_v36 = vpop.f32.mrf.mxu0 }
 0x5fd   :  { %v5695_v46 = vmul.f32 0.35355338, %v1171_v36 }
 0x5fe   :  { %v4860_v56 = vpop.f32.mrf.mxu0 }
 0x5ff   :  { %v1611_v58 = vsel %vm320_vm2, %v5695_v46, -inf }
 0x600   :  { %1612 = vmax.xlane.f32.xlu1 %v1611_v58 }
 0x604   :  { %1615 = vmax.xlane.f32.xlu1 %v1614_v59  ;;  %v1327_v60 = vpop.f32.mrf.mxu0 }
 0x605   :  { %v5704_v61 = vmul.f32 0.35355338, %v1327_v60 }
 0x606   :  { %v4870_v13 = vpop.f32.mrf.mxu0 }
 0x607   :  { %v1617_v63 = vsel %vm320_vm2, %v5704_v61, -inf }
 0x608   :  { %1618 = vmax.xlane.f32.xlu1 %v1617_v63  ;;  %v1483_v37 = vpop.f32.mrf.mxu0 }
 0x609   :  { %v5711_v50 = vmul.f32 0.35355338, %v1483_v37 }
 0x60a   :  { %v4880_v0 = vpop.f32.mrf.mxu0 }
 0x60b   :  { %v1623_v4 = vsel %vm320_vm2, %v5711_v50, -inf }
 0x60c   :  { %1621 = vmax.xlane.f32.xlu1 %v1620_v1 }
 0x60d   :  { %v1829_v3 = vpop.f32.mrf.mxu0 }
 0x60e   :  { %4904 = vmatmul.mubr.msk.f32.vlgmr.msra.gmra.mxu1 %vm320_vm2, %v1829_v3 }
 0x60f   :  { %v4890_v40 = vpop.f32.mrf.mxu0  ;;  %4912 = vmatpush3.msra.mxu1 %v5718_v2  ;;  %4913 = vmatprep.mubr.msk.f32.mxu1 %vm5178_vm1, %v5177_v10 }
 0x610   :  { %1624 = vmax.xlane.f32.xlu1 %v1623_v4  ;;  %4921 = vmatprep.subr.mxu1 %v5177_v10 }
 0x611   :  { %v5727_v5 = vpop.f32.mrf.mxu0 }
 0x613   :  { %v4900_v6 = vpop.f32.mrf.mxu0 }
 0x615   :  { %v2127_v8 = vpop.f32.mrf.mxu0 }
 0x616   :  { %4914 = vmatmul.mubr.msk.f32.vlgmr.msra.gmra.mxu1 %vm320_vm2, %v2127_v8 }
 0x617   :  { %v4910_v9 = vpop.f32.mrf.mxu0  ;;  %4922 = vmatpush3.msra.mxu1 %v5732_v7  ;;  %4923 = vmatprep.mubr.msk.f32.mxu1 %vm5178_vm1, %v5177_v10 }
 0x618   :  { %4931 = vmatprep.subr.mxu1 %v5177_v10 }
 0x627   :  { %v1628_v12 = vpop.xlane.xlu0 %1627 }
 0x628   :  { %v1644_v16 = vsub.f32 %v5669_v48, %v1628_v12 }
 0x62a   :  { %v1675_v17 = vmul.f32 1.442695, %v1644_v16 }
 0x62c   :  { %5107 = vpow2.f32 %v1675_v17 }
 0x62d   :  { %5109 = vrcp.f32 %v1706_v14 }
 0x639   :  { %v5740_v18 = vpop.eup %5107 }
 0x63a   :  { %v1722_v20 = vsel %vm320_vm2, %v5740_v18, 0.0  ;;  %v5110_v19 = vpop.eup %5109 }
 0x63b   :  { %1723 = vadd.xlane.f32.xlu0 %v1722_v20  ;;  %v1750_v42 = vmul.f32 %v5110_v19, %v5647_v33 }
 0x651   :  { %4003 = vrot.lane.b32.xlu0 %v5385_v11, %s5191_s29 }
 0x655   :  { %v2277_v22 = vpop.f32.mrf.mxu0 }
 0x656   :  { %4924 = vmatmul.mubr.msk.f32.vlgmr.msra.gmra.mxu1 %vm320_vm2, %v2277_v22 }
 0x657   :  { %v4920_v23 = vpop.f32.mrf.mxu0  ;;  %4932 = vmatpush3.msra.mxu1 %v5749_v21  ;;  %4933 = vmatprep.mubr.msk.f32.mxu1 %vm5178_vm1, %v5177_v10 }
 0x658   :  { %4941 = vmatprep.subr.mxu1 %v5177_v10 }
 0x659   :  { %v2427_v26 = vpop.f32.mrf.mxu0 }
 0x65a   :  { %4934 = vmatmul.mubr.msk.f32.vlgmr.msra.gmra.mxu1 %vm320_vm2, %v2427_v26 }
 0x65b   :  { %v4930_v27 = vpop.f32.mrf.mxu0  ;;  %4942 = vmatpush3.msra.mxu1 %v5759_v24  ;;  %4943 = vmatprep.mubr.msk.f32.mxu1 %vm5178_vm1, %v5177_v10 }
 0x65c   :  { %4951 = vmatprep.subr.mxu1 %v5177_v10 }
 0x65d   :  { %v2577_v29 = vpop.f32.mrf.mxu0 }
 0x65e   :  { %4944 = vmatmul.mubr.msk.f32.vlgmr.msra.gmra.mxu1 %vm320_vm2, %v2577_v29 }
 0x65f   :  { %v4940_v30 = vpop.f32.mrf.mxu0  ;;  %4952 = vmatpush3.msra.mxu1 %v5769_v28  ;;  %4953 = vmatprep.mubr.msk.f32.mxu1 %vm5178_vm1, %v5177_v10 }
 0x660   :  { %4961 = vmatprep.subr.mxu1 %v5177_v10 }
 0x661   :  { %v2727_v34 = vpop.f32.mrf.mxu0 }
 0x662   :  { %4954 = vmatmul.mubr.msk.f32.vlgmr.msra.gmra.mxu1 %vm320_vm2, %v2727_v34 }
 0x663   :  { %v4950_v35 = vpop.f32.mrf.mxu0  ;;  %4962 = vmatpush3.msra.mxu1 %v5779_v31  ;;  %4963 = vmatprep.mubr.msk.f32.mxu1 %vm5178_vm1, %v5177_v10 }
 0x664   :  { %4971 = vmatprep.subr.mxu1 %v5177_v10 }
 0x665   :  { %v2877_v38 = vpop.f32.mrf.mxu0 }
 0x666   :  { %4964 = vmatmul.mubr.msk.f32.vlgmr.msra.gmra.mxu1 %vm320_vm2, %v2877_v38 }
 0x667   :  { %4972 = vmatpush3.msra.mxu1 %v3032_v15  ;;  %v4960_v39 = vpop.f32.mrf.mxu0  ;;  %4973 = vmatprep.mubr.msk.f32.mxu1 %vm5178_vm1, %v5177_v10 }
 0x668   :  { %4981 = vmatprep.subr.mxu1 %v5177_v10 }
 0x66a   :  { %4974 = vmatmul.mubr.msk.f32.vlgmr.msra.gmra.mxu1 %vm320_vm2, %v1750_v42 }
 0x66b   :  { %4982 = vmatpush3.msra.mxu1 %v5657_v41  ;;  %4983 = vmatprep.mubr.msk.f32.mxu1 %vm5178_vm1, %v5177_v10 }
 0x66c   :  { %4991 = vmatprep.subr.mxu1 %v5177_v10 }
 0x689   :  { %v1613_v44 = vpop.xlane.xlu1 %1612 }
 0x68d   :  { %v1616_v45 = vpop.xlane.xlu1 %1615 }
 0x68e   :  { %v1640_v47 = vsub.f32 %v5698_v57, %v1616_v45 }
 0x690   :  { %v1667_v48 = vmul.f32 1.442695, %v1640_v47  ;;  %v5153_v47 = vld [vmem:[%s6146_s27] sm:$0xff] }
 0x691   :  { %v1619_v41 = vpop.xlane.xlu1 %1618 }
 0x692   :  { %5111 = vpow2.f32 %v1667_v48  ;;  %v1641_v1 = vsub.f32 %v5704_v61, %v1619_v41 }
 0x694   :  { %v1669_v40 = vmul.f32 1.442695, %v1641_v1 }
 0x695   :  { %v1622_v51 = vpop.xlane.xlu1 %1621 }
 0x696   :  { %v1642_v32 = vsub.f32 %v5707_v62, %v1622_v51  ;;  %v1639_v62 = vsub.f32 %v5695_v46, %v1613_v44  ;;  %v5838_v44 = vld [vmem:[%s6134_s7] ss:$0 sm:$0xff] }
 0x698   :  { %v1671_v54 = vmul.f32 1.442695, %v1642_v32  ;;  %v1665_v0 = vmul.f32 1.442695, %v1639_v62 }
 0x699   :  { %v1625_v3 = vpop.xlane.xlu1 %1624 }
 0x69a   :  { %5113 = vpow2.f32 %v1671_v54  ;;  %v1643_v4 = vsub.f32 %v5711_v50, %v1625_v3 }
 0x69b   :  { %5115 = vpow2.f32 %v1661_v55  ;;  %v3254_v55 = vpop.permute.xlu0 %3253 }
 0x69c   :  { %5117 = vpow2.f32 %v1665_v0 }
 0x69d   :  { %5119 = vpow2.f32 %v1669_v40 }
 0x69f   :  { %v5797_v49 = vpop.eup %5111 }
 0x6a0   :  { %v1710_v33 = vsel %vm320_vm2, %v5797_v49, 0.0 }
 0x6a1   :  { %1711 = vadd.xlane.f32.xlu1 %v1710_v33 }
 0x6a7   :  { %v5810_v13 = vpop.eup %5113 }
 0x6a8   :  { %v1716_v63 = vsel %vm320_vm2, %v5810_v13, 0.0  ;;  %v5116_v37 = vpop.eup %5115 }
 0x6a9   :  { %v1701_v53 = vsel %vm320_vm2, %v5116_v37, 0.0  ;;  %v5820_v6 = vpop.eup %5117 }
 0x6aa   :  { %v1707_v9 = vsel %vm320_vm2, %v5820_v6, 0.0  ;;  %v5824_v14 = vpop.eup %5119 }
 0x6ab   :  { %v1713_v61 = vsel %vm320_vm2, %v5824_v14, 0.0 }
 0x6b2   :  { %2955 = vrot.lane.b32.xlu1 %v5385_v11, %s5192_s1 }
 0x6b6   :  { %3403 = vrot.lane.b32.xlu1 %v5385_v11, %s5193_s30 }
 0x6ba   :  { %3553 = vrot.lane.b32.xlu1 %v5385_v11, %s5188_s25 }
 0x6ce   :  { %v2051_v36 = vpop.f32.mrf.mxu1 }
 0x6cf   :  { %v2052_v57 = vadd.f32 %v2051_v36, %v5727_v5  ;;  %v1673_v5 = vmul.f32 1.442695, %v1643_v4 }
 0x6d0   :  { %v4905_v56 = vpop.f32.mrf.mxu1 }
 0x6d1   :  { %5121 = vpow2.f32 %v1673_v5 }
 0x6d6   :  { %v2200_v58 = vpop.f32.mrf.mxu1 }
 0x6d7   :  { %v2204_v59 = vadd.f32 %v2200_v58, %v2052_v57 }
 0x6d8   :  { %v4915_v60 = vpop.f32.mrf.mxu1 }
 0x6de   :  { %1717 = vadd.xlane.f32.xlu1 %v1716_v63  ;;  %v5828_v12 = vpop.eup %5121  ;;  %v1724_v63 = vpop.xlane.xlu0 %1723 }
 0x6df   :  { %v1719_v17 = vsel %vm320_vm2, %v5828_v12, 0.0 }
 0x6e2   :  { %1702 = vadd.xlane.f32.xlu1 %v1701_v53  ;;  %v4004_v5 = vpop.permute.xlu0 %4003 }
 0x6f3   :  { %3703 = vrot.lane.b32.xlu1 %v5385_v11, %s5189_s26 }
 0x716   :  { %v2350_v8 = vpop.f32.mrf.mxu1 }
 0x717   :  { %1708 = vadd.xlane.f32.xlu1 %v1707_v9  ;;  %v2354_v19 = vadd.f32 %v2350_v8, %v2204_v59 }
 0x718   :  { %v4925_v46 = vpop.f32.mrf.mxu1 }
 0x71a   :  { %v2500_v15 = vpop.f32.mrf.mxu1 }
 0x71b   :  { %1714 = vadd.xlane.f32.xlu1 %v1713_v61  ;;  %v2504_v38 = vadd.f32 %v2500_v15, %v2354_v19 }
 0x71c   :  { %v4935_v50 = vpop.f32.mrf.mxu1 }
 0x71e   :  { %v2650_v16 = vpop.f32.mrf.mxu1 }
 0x71f   :  { %1720 = vadd.xlane.f32.xlu1 %v1719_v17  ;;  %v2654_v39 = vadd.f32 %v2650_v16, %v2504_v38 }
 0x720   :  { %v4945_v20 = vpop.f32.mrf.mxu1 }
 0x722   :  { %v2800_v22 = vpop.f32.mrf.mxu1 }
 0x723   :  { %v2804_v42 = vadd.f32 %v2800_v22, %v2654_v39 }
 0x724   :  { %v4955_v23 = vpop.f32.mrf.mxu1 }
 0x726   :  { %v2950_v26 = vpop.f32.mrf.mxu1 }
 0x727   :  { %v2954_v43 = vadd.f32 %v2950_v26, %v2804_v42 }
 0x728   :  { %v4965_v27 = vpop.f32.mrf.mxu1 }
 0x729   :  { %v4160_v45 = vadd.f32 %v5838_v44, %v2954_v43 }
 0x72a   :  { %v1712_v29 = vpop.xlane.xlu1 %1711  ;;  %v3103_v30 = vpop.f32.mrf.mxu1 }
 0x72b   :  { %v5844_v48 = vadd.f32 %v5153_v47, %v4160_v45 }
 0x72c   :  { %v4975_v34 = vpop.f32.mrf.mxu1 }
 0x72e   :  { %v2956_v35 = vpop.permute.xlu1 %2955 }
 0x72f   :  { %4967 = vmatpush3.msra.mxu0 %v2956_v35 }
 0x730   :  { %3853 = vrot.lane.b32.xlu1 %v5385_v11, %s5190_s28  ;;  %4976 = vmatprep.subr.mxu0 %v5177_v10  ;;  %v4166_v11 = vsel %vm60_vm0, %v5844_v48, 0.0 }
 0x732   :  { %v3404_v33 = vpop.permute.xlu1 %3403 }
 0x736   :  { %v3554_v41 = vpop.permute.xlu1 %3553 }
 0x754   :  { %4167 = vadd.xlane.f32.xlu1 %v4166_v11 }
 0x767   :  { %v1718_v51 = vpop.xlane.xlu1 %1717 }
 0x76b   :  { %v1703_v32 = vpop.xlane.xlu1 %1702 }
 0x76c   :  { %5123 = vrcp.f32 %v1703_v32 }
 0x76f   :  { %v3704_v36 = vpop.permute.xlu1 %3703 }
 0x779   :  { %v5124_v52 = vpop.eup %5123 }
 0x77a   :  { %v1749_v54 = vmul.f32 %v5124_v52, %v5116_v37 }
 0x77c   :  { %4969 = vmatmul.mubr.msk.f32.vlgmr.msra.gmra.mxu0 %vm320_vm2, %v1749_v54 }
 0x77d   :  { %4977 = vmatpush3.msra.mxu0 %v5630_v25  ;;  %4978 = vmatprep.mubr.msk.f32.mxu0 %vm5178_vm1, %v5177_v10 }
 0x77e   :  { %4986 = vmatprep.subr.mxu0 %v5177_v10 }
 0x780   :  { %4979 = vmatmul.mubr.msk.f32.vlgmr.msra.gmra.mxu0 %vm320_vm2, %v3103_v30 }
 0x781   :  { %4987 = vmatpush3.msra.mxu0 %v3254_v55  ;;  %4988 = vmatprep.mubr.msk.f32.mxu0 %vm5178_vm1, %v5177_v10  ;;  %v5154_v55 = vld [vmem:[%s6146_s27 + $0x8] sm:$0xff] }
 0x782   :  { %4996 = vmatprep.subr.mxu0 %v5177_v10 }
 0x7a0   :  { %v1709_v56 = vpop.xlane.xlu1 %1708 }
 0x7a1   :  { %5125 = vrcp.f32 %v1709_v56 }
 0x7a2   :  { %5127 = vrcp.f32 %v1712_v29 }
 0x7a4   :  { %v1715_v57 = vpop.xlane.xlu1 %1714 }
 0x7a5   :  { %5129 = vrcp.f32 %v1715_v57 }
 0x7a6   :  { %5131 = vrcp.f32 %v1718_v51 }
 0x7a8   :  { %v1721_v25 = vpop.xlane.xlu1 %1720 }
 0x7a9   :  { %5133 = vrcp.f32 %v1721_v25 }
 0x7aa   :  { %5135 = vrcp.f32 %v1724_v63  ;;  %v4219_v63 = vld [vmem:[%s6137_s10 + $0x58] sm:$0xff] }
 0x7ac   :  { %v3854_v3 = vpop.permute.xlu1 %3853 }
 0x7ae   :  { %v5126_v58 = vpop.eup %5125 }
 0x7af   :  { %v1751_v59 = vmul.f32 %v5126_v58, %v5820_v6  ;;  %v5128_v60 = vpop.eup %5127  ;;  %v4223_v58 = vld [vmem:[%s6137_s10 + $0x78] sm:$0xff] }
 0x7b0   :  { %v1752_v37 = vmul.f32 %v5128_v60, %v5797_v49  ;;  %v4220_v60 = vld [vmem:[%s6137_s10 + $0x60] sm:$0xff] }
 0x7b1   :  { %4989 = vmatmul.mubr.msk.f32.vlgmr.msra.gmra.mxu0 %vm320_vm2, %v1751_v59  ;;  %v4221_v59 = vld [vmem:[%s6137_s10 + $0x68] sm:$0xff] }
 0x7b2   :  { %4997 = vmatpush3.msra.mxu0 %v3404_v33  ;;  %4998 = vmatprep.mubr.msk.f32.mxu0 %vm5178_vm1, %v5177_v10  ;;  %v5130_v53 = vpop.eup %5129 }
 0x7b3   :  { %5006 = vmatprep.subr.mxu0 %v5177_v10  ;;  %v1753_v62 = vmul.f32 %v5130_v53, %v5824_v14  ;;  %v5132_v0 = vpop.eup %5131  ;;  %v4217_v53 = vld [vmem:[%s6137_s10 + $0x48] sm:$0xff] }
 0x7b4   :  { %v1754_v49 = vmul.f32 %v5132_v0, %v5810_v13  ;;  %v4215_v0 = vld [vmem:[%s6137_s10 + $0x38] sm:$0xff] }
 0x7b5   :  { %4999 = vmatmul.mubr.msk.f32.vlgmr.msra.gmra.mxu0 %vm320_vm2, %v1752_v37  ;;  %v4218_v37 = vld [vmem:[%s6137_s10 + $0x50] sm:$0xff] }
 0x7b6   :  { %5007 = vmatpush3.msra.mxu0 %v3554_v41  ;;  %5008 = vmatprep.mubr.msk.f32.mxu0 %vm5178_vm1, %v5177_v10  ;;  %v5134_v1 = vpop.eup %5133 }
 0x7b7   :  { %5016 = vmatprep.subr.mxu0 %v5177_v10  ;;  %v1755_v40 = vmul.f32 %v5134_v1, %v5828_v12  ;;  %v5136_v4 = vpop.eup %5135  ;;  %v4213_v1 = vld [vmem:[%s6137_s10 + $0x28] sm:$0xff] }
 0x7b8   :  { %v1756_v13 = vmul.f32 %v5136_v4, %v5740_v18  ;;  %v4210_v4 = vld [vmem:[%s6137_s10 + $0x10] sm:$0xff] }
 0x7b9   :  { %5009 = vmatmul.mubr.msk.f32.vlgmr.msra.gmra.mxu0 %vm320_vm2, %v1753_v62  ;;  %v4216_v62 = vld [vmem:[%s6137_s10 + $0x40] sm:$0xff] }
 0x7ba   :  { %5017 = vmatpush3.msra.mxu0 %v3704_v36  ;;  %5018 = vmatprep.mubr.msk.f32.mxu0 %vm5178_vm1, %v5177_v10 }
 0x7bb   :  { %5026 = vmatprep.subr.mxu0 %v5177_v10 }
 0x7bd   :  { %5019 = vmatmul.mubr.msk.f32.vlgmr.msra.gmra.mxu0 %vm320_vm2, %v1754_v49  ;;  %v4214_v49 = vld [vmem:[%s6137_s10 + $0x30] sm:$0xff] }
 0x7be   :  { %5027 = vmatpush3.msra.mxu0 %v3854_v3  ;;  %5028 = vmatprep.mubr.msk.f32.mxu0 %vm5178_vm1, %v5177_v10  ;;  %v4212_v3 = vld [vmem:[%s6137_s10 + $0x20] sm:$0xff] }
 0x7bf   :  { %5036 = vmatprep.subr.mxu0 %v5177_v10 }
 0x7c1   :  { %5029 = vmatmul.mubr.msk.f32.vlgmr.msra.gmra.mxu0 %vm320_vm2, %v1755_v40  ;;  %v4211_v40 = vld [vmem:[%s6137_s10 + $0x18] sm:$0xff] }
 0x7c2   :  { %5037 = vmatpush3.msra.mxu0 %v4004_v5  ;;  %5038 = vmatprep.mubr.msk.f32.mxu0 %vm5178_vm1, %v5177_v10  ;;  %v4209_v5 = vld [vmem:[%s6137_s10 + $0x8] sm:$0xff] }
 0x7c3   :  { %4258 = vmatprep.subr.mxu0 %v4223_v58 }
 0x7c5   :  { %5039 = vmatmul.mubr.msk.f32.vlgmr.msra.gmra.mxu0 %vm320_vm2, %v1756_v13  ;;  %v4208_v13 = vld [vmem:[%s6137_s10] sm:$0xff] }
 0x7c6   :  { %4306 = vmatprep.mubr.f32.mxu0 %v5177_v10 }
 0x7dd   :  { %v4168_v42 = vpop.xlane.xlu1 %4167 }
 0x7de   :  { %v4172_v11 = vmul.f32 0.015625, %v4168_v42 }
 0x7e0   :  { %v4174_v52 = vsub.f32 %v5844_v48, %v4172_v11 }
 0x7e2   :  { %v4176_v57 = vmul.f32 %v4174_v52, %v4174_v52 }
 0x7e4   :  { %v4178_v25 = vsel %vm60_vm0, %v4176_v57, 0.0  ;;  %v4419_v57 = vld [vmem:[%s6141_s14 + $0x78] sm:$0xff] }
 0x83c   :  { %v3027_v6 = vpop.f32.mrf.mxu0 }
 0x83d   :  { %4984 = vmatmul.mubr.msk.f32.vlgmr.msra.gmra.mxu1 %vm320_vm2, %v3027_v6 }
 0x83e   :  { %v4970_v8 = vpop.f32.mrf.mxu0  ;;  %4992 = vmatpush3.msra.mxu1 %v5718_v2  ;;  %4993 = vmatprep.mubr.msk.f32.mxu1 %vm5178_vm1, %v5177_v10 }
 0x83f   :  { %5001 = vmatprep.subr.mxu1 %v5177_v10 }
 0x840   :  { %v3176_v9 = vpop.f32.mrf.mxu0 }
 0x842   :  { %v4980_v14 = vpop.f32.mrf.mxu0 }
 0x871   :  { %v3325_v46 = vpop.f32.mrf.mxu0 }
 0x872   :  { %4994 = vmatmul.mubr.msk.f32.vlgmr.msra.gmra.mxu1 %vm320_vm2, %v3325_v46 }
 0x873   :  { %5002 = vmatpush3.msra.mxu1 %v5732_v7  ;;  %v4990_v18 = vpop.f32.mrf.mxu0  ;;  %5003 = vmatprep.mubr.msk.f32.mxu1 %vm5178_vm1, %v5177_v10 }
 0x874   :  { %5011 = vmatprep.subr.mxu1 %v5177_v10 }
 0x875   :  { %v3475_v15 = vpop.f32.mrf.mxu0 }
 0x876   :  { %5004 = vmatmul.mubr.msk.f32.vlgmr.msra.gmra.mxu1 %vm320_vm2, %v3475_v15 }
 0x877   :  { %5012 = vmatpush3.msra.mxu1 %v5749_v21  ;;  %v5000_v2 = vpop.f32.mrf.mxu0  ;;  %5013 = vmatprep.mubr.msk.f32.mxu1 %vm5178_vm1, %v5177_v10 }
 0x878   :  { %5021 = vmatprep.subr.mxu1 %v5177_v10 }
 0x879   :  { %v3625_v61 = vpop.f32.mrf.mxu0 }
 0x87a   :  { %5014 = vmatmul.mubr.msk.f32.vlgmr.msra.gmra.mxu1 %vm320_vm2, %v3625_v61 }
 0x87b   :  { %5022 = vmatpush3.msra.mxu1 %v5759_v24  ;;  %v5010_v7 = vpop.f32.mrf.mxu0  ;;  %5023 = vmatprep.mubr.msk.f32.mxu1 %vm5178_vm1, %v5177_v10 }
 0x87c   :  { %5031 = vmatprep.subr.mxu1 %v5177_v10  ;;  %v4609_v7 = vld [vmem:[%s6135_s8] ss:$0 sm:$0xff] }
 0x87d   :  { %v3775_v12 = vpop.f32.mrf.mxu0 }
 0x87e   :  { %5024 = vmatmul.mubr.msk.f32.vlgmr.msra.gmra.mxu1 %vm320_vm2, %v3775_v12 }
 0x87f   :  { %5032 = vmatpush3.msra.mxu1 %v5769_v28  ;;  %v5020_v21 = vpop.f32.mrf.mxu0  ;;  %5033 = vmatprep.mubr.msk.f32.mxu1 %vm5178_vm1, %v5177_v10 }
 0x880   :  { %5041 = vmatprep.subr.mxu1 %v5177_v10  ;;  %v4610_v21 = vld [vmem:[%s6136_s9] ss:$0 sm:$0xff] }
 0x881   :  { %v3925_v50 = vpop.f32.mrf.mxu0 }
 0x882   :  { %5034 = vmatmul.mubr.msk.f32.vlgmr.msra.gmra.mxu1 %vm320_vm2, %v3925_v50 }
 0x883   :  { %5042 = vmatpush3.msra.mxu1 %v5779_v31  ;;  %v5030_v24 = vpop.f32.mrf.mxu0  ;;  %5043 = vmatprep.mubr.msk.f32.mxu1 %vm5178_vm1, %v5177_v10 }
 0x885   :  { %v4075_v16 = vpop.f32.mrf.mxu0 }
 0x886   :  { %5044 = vmatmul.mubr.msk.f32.vlgmr.msra.gmra.mxu1 %vm320_vm2, %v4075_v16 }
 0x887   :  { %v5040_v17 = vpop.f32.mrf.mxu0 }
 0x8fd   :  { %v3249_v28 = vpop.f32.mrf.mxu1 }
 0x8fe   :  { %v3250_v30 = vadd.f32 %v3249_v28, %v3176_v9 }
 0x8ff   :  { %v4985_v20 = vpop.f32.mrf.mxu1 }
 0x932   :  { %v3398_v22 = vpop.f32.mrf.mxu1 }
 0x933   :  { %v3402_v35 = vadd.f32 %v3398_v22, %v3250_v30 }
 0x934   :  { %v4995_v23 = vpop.f32.mrf.mxu1 }
 0x936   :  { %v3548_v26 = vpop.f32.mrf.mxu1 }
 0x937   :  { %v3552_v31 = vadd.f32 %v3548_v26, %v3402_v35 }
 0x938   :  { %v5005_v27 = vpop.f32.mrf.mxu1 }
 0x939   :  { %v4226_v27 = vlaneseq }
 0x93a   :  { %v3698_v29 = vpop.f32.mrf.mxu1 }
 0x93b   :  { %v3702_v39 = vadd.f32 %v3698_v29, %v3552_v31  ;;  %v4227_v29 = vshrl.u32 %v4226_v27, 7  ;;  %v4426_v27 = vld [vmem:[%s6141_s14 + $0xb0] sm:$0xff] }
 0x93c   :  { %v5015_v34 = vpop.f32.mrf.mxu1 }
 0x93d   :  { %v5983_v30 = vsub.s32 0, %v4227_v29  ;;  %v4224_v34 = vld [vmem:[%s6138_s11] sm:$0x3]  ;;  %v5988_v35 = vsub.s32 1, %v4227_v29  ;;  %v4410_v29 = vld [vmem:[%s6141_s14 + $0x30] sm:$0xff] }
 0x93e   :  { %v3848_v19 = vpop.f32.mrf.mxu1 }
 0x93f   :  { %v3852_v45 = vadd.f32 %v3848_v19, %v3702_v39  ;;  %v4233_v19 = vrot.slane %v4224_v34, %v5988_v35 }
 0x940   :  { %v5025_v38 = vpop.f32.mrf.mxu1 }
 0x942   :  { %v3998_v43 = vpop.f32.mrf.mxu1 }
 0x943   :  { %v4002_v33 = vadd.f32 %v3998_v43, %v3852_v45 }
 0x944   :  { %v5035_v47 = vpop.f32.mrf.mxu1 }
 0x946   :  { %v4148_v41 = vpop.f32.mrf.mxu1 }
 0x947   :  { %v4152_v51 = vadd.f32 %v4148_v41, %v4002_v33 }
 0x948   :  { %v5045_v32 = vpop.f32.mrf.mxu1 }
 0x949   :  { %v4161_v54 = vadd.f32 %v5838_v44, %v4152_v51  ;;  %v4222_v44 = vld [vmem:[%s6137_s10 + $0x70] sm:$0xff] }
 0x94a   :  { %4259 = vmatpush1.msra.mxu0 %v4222_v44 }
 0x94b   :  { %v5919_v36 = vadd.f32 %v5154_v55, %v4161_v54  ;;  %4260 = vmatprep.subr.mxu0 %v4221_v59 }
 0x94c   :  { %4261 = vmatpush1.msra.mxu0 %v4220_v60 }
 0x94d   :  { %v4169_v56 = vsel %vm60_vm0, %v5919_v36, 0.0  ;;  %4262 = vmatprep.subr.mxu0 %v4219_v63 }
 0x94e   :  { %4170 = vadd.xlane.f32.xlu0 %v4169_v56  ;;  %4263 = vmatpush1.msra.mxu0 %v4218_v37  ;;  %v4435_v56 = vld [vmem:[%s6141_s14 + $0xf8] sm:$0xff] }
 0x94f   :  { %4264 = vmatprep.subr.mxu0 %v4217_v53  ;;  %4730 = vmatprep.subr.mxu1 %v4435_v56 }
 0x950   :  { %4265 = vmatpush1.msra.mxu0 %v4216_v62  ;;  %4731 = vmatpush3.msra.mxu1 %v4419_v57 }
 0x951   :  { %4266 = vmatprep.subr.mxu0 %v4215_v0 }
 0x952   :  { %4179 = vadd.xlane.f32.xlu0 %v4178_v25  ;;  %4267 = vmatpush1.msra.mxu0 %v4214_v49 }
 0x953   :  { %4268 = vmatprep.subr.mxu0 %v4213_v1 }
 0x954   :  { %4269 = vmatpush1.msra.mxu0 %v4212_v3 }
 0x955   :  { %4270 = vmatprep.subr.mxu0 %v4211_v40 }
 0x956   :  { %4271 = vmatpush1.msra.mxu0 %v4210_v4 }
 0x957   :  { %4272 = vmatprep.subr.mxu0 %v4209_v5 }
 0x958   :  { %4273 = vmatpush1.msra.mxu0 %v4208_v13 }
 0x9d7   :  { %v4171_v6 = vpop.xlane.xlu0 %4170 }
 0x9d8   :  { %v4173_v8 = vmul.f32 0.015625, %v4171_v6 }
 0x9da   :  { %v4175_v9 = vsub.f32 %v5919_v36, %v4173_v8 }
 0x9db   :  { %v4180_v14 = vpop.xlane.xlu0 %4179 }
 0x9dc   :  { %v4184_v46 = vmul.f32 0.015625, %v4180_v14  ;;  %v4177_v18 = vmul.f32 %v4175_v9, %v4175_v9 }
 0x9de   :  { %v4186_v15 = vadd.f32 1e-05, %v4184_v46  ;;  %v4181_v2 = vsel %vm60_vm0, %v4177_v18, 0.0  ;;  %v4434_v18 = vld [vmem:[%s6141_s14 + $0xf0] sm:$0xff] }
 0x9df   :  { %4182 = vadd.xlane.f32.xlu1 %v4181_v2  ;;  %4732 = vmatprep.subr.mxu1 %v4434_v18  ;;  %v4433_v2 = vld [vmem:[%s6141_s14 + $0xe8] sm:$0xff] }
 0x9e0   :  { %5137 = vrsqrt.f32 %v4186_v15  ;;  %v4418_v15 = vld [vmem:[%s6141_s14 + $0x70] sm:$0xff] }
 0x9e1   :  { %4733 = vmatpush3.msra.mxu1 %v4418_v15 }
 0x9e2   :  { %4734 = vmatprep.subr.mxu1 %v4433_v2 }
 0x9ed   :  { %v5138_v61 = vpop.eup %5137 }
 0x9ee   :  { %v4190_v12 = vmul.f32 %v5138_v61, %v4174_v52  ;;  %v4417_v61 = vld [vmem:[%s6141_s14 + $0x68] sm:$0xff] }
 0x9ef   :  { %4735 = vmatpush3.msra.mxu1 %v4417_v61 }
 0x9f0   :  { %v4198_v50 = vmul.f32 %v4609_v7, %v4190_v12  ;;  %v4416_v12 = vld [vmem:[%s6141_s14 + $0x60] sm:$0xff] }
 0x9f2   :  { %v4206_v24 = vadd.f32 %v4610_v21, %v4198_v50  ;;  %v4415_v50 = vld [vmem:[%s6141_s14 + $0x58] sm:$0xff] }
 0x9f4   :  { %4611 = vmatmul.mubr.msk.f32.vlgmr.msra.gmra.mxu0 %vm60_vm0, %v4206_v24  ;;  %v4430_v24 = vld [vmem:[%s6141_s14 + $0xd0] sm:$0xff] }
 0x9f5   :  { %4312 = vmatprep.mubr.f32.mxu0 %v5177_v10  ;;  %v4229_v10 = vrot.slane %v4224_v34, %v5983_v30  ;;  %v4425_v34 = vld [vmem:[%s6141_s14 + $0xa8] sm:$0xff] }
 0xa68   :  { %v4183_v16 = vpop.xlane.xlu1 %4182 }
 0xa69   :  { %v4185_v17 = vmul.f32 0.015625, %v4183_v16  ;;  %v4414_v16 = vld [vmem:[%s6141_s14 + $0x50] sm:$0xff] }
 0xa6b   :  { %v4187_v28 = vadd.f32 1e-05, %v4185_v17  ;;  %v4429_v17 = vld [vmem:[%s6141_s14 + $0xc8] sm:$0xff] }
 0xa6d   :  { %5139 = vrsqrt.f32 %v4187_v28  ;;  %v4413_v28 = vld [vmem:[%s6141_s14 + $0x48] sm:$0xff] }
 0xa7a   :  { %v5140_v20 = vpop.eup %5139 }
 0xa7b   :  { %v4191_v22 = vmul.f32 %v5140_v20, %v4175_v9  ;;  %v4428_v20 = vld [vmem:[%s6141_s14 + $0xc0] sm:$0xff] }
 0xa7d   :  { %v4199_v23 = vmul.f32 %v4609_v7, %v4191_v22  ;;  %v4432_v7 = vld [vmem:[%s6141_s14 + $0xe0] sm:$0xff] }
 0xa7e   :  { %4736 = vmatprep.subr.mxu1 %v4432_v7  ;;  %v4412_v22 = vld [vmem:[%s6141_s14 + $0x40] sm:$0xff] }
 0xa7f   :  { %v4207_v26 = vadd.f32 %v4610_v21, %v4199_v23  ;;  %4737 = vmatpush3.msra.mxu1 %v4416_v12  ;;  %v4431_v21 = vld [vmem:[%s6141_s14 + $0xd8] sm:$0xff] }
 0xa80   :  { %4738 = vmatprep.subr.mxu1 %v4431_v21  ;;  %v4427_v23 = vld [vmem:[%s6141_s14 + $0xb8] sm:$0xff] }
 0xa81   :  { %4612 = vmatmul.mubr.msk.f32.gmra.mxu0 %vm60_vm0, %v4207_v26  ;;  %4739 = vmatpush3.msra.mxu1 %v4415_v50  ;;  %v4411_v26 = vld [vmem:[%s6141_s14 + $0x38] sm:$0xff] }
 0xa82   :  { %4740 = vmatprep.subr.mxu1 %v4430_v24 }
 0xa83   :  { %4741 = vmatpush3.msra.mxu1 %v4414_v16 }
 0xa84   :  { %4742 = vmatprep.subr.mxu1 %v4429_v17 }
 0xa85   :  { %4743 = vmatpush3.msra.mxu1 %v4413_v28 }
 0xa86   :  { %4744 = vmatprep.subr.mxu1 %v4428_v20 }
 0xa87   :  { %4745 = vmatpush3.msra.mxu1 %v4412_v22 }
 0xa88   :  { %4746 = vmatprep.subr.mxu1 %v4427_v23 }
 0xa89   :  { %4747 = vmatpush3.msra.mxu1 %v4411_v26 }
 0xa8a   :  { %4748 = vmatprep.subr.mxu1 %v4426_v27 }
 0xa8b   :  { %4749 = vmatpush3.msra.mxu1 %v4410_v29 }
 0xa8c   :  { %4750 = vmatprep.subr.mxu1 %v4425_v34 }
 0xab4   :  { %v4308_v31 = vpop.f32.mrf.mxu0 }
 0xab5   :  { %v4309_v38 = vadd.f32 %v4308_v31, %v4229_v10  ;;  %v4408_v31 = vld [vmem:[%s6141_s14 + $0x20] sm:$0xff] }
 0xab6   :  { %v4310_v39 = vpop.f32.mrf.mxu0 }
 0xab7   :  { %v4323_v42 = vmul.f32 0.70710677, %v4309_v38  ;;  %v4311_v43 = vadd.f32 %v4310_v39, %v4233_v19  ;;  %v4319_v41 = vmul.f32 0.5, %v4309_v38  ;;  %v4423_v38 = vld [vmem:[%s6141_s14 + $0x98] sm:$0xff] }
 0xab8   :  { %v4407_v39 = vld [vmem:[%s6141_s14 + $0x18] sm:$0xff] }
 0xab9   :  { %5141 = verf.f32 %v4323_v42  ;;  %v4324_v45 = vmul.f32 0.70710677, %v4311_v43  ;;  %v4320_v51 = vmul.f32 0.5, %v4311_v43  ;;  %v4422_v42 = vld [vmem:[%s6141_s14 + $0x90] sm:$0xff] }
 0xaba   :  { %v4406_v43 = vld [vmem:[%s6141_s14 + $0x10] sm:$0xff] }
 0xabb   :  { %5143 = verf.f32 %v4324_v45  ;;  %v4421_v45 = vld [vmem:[%s6141_s14 + $0x88] sm:$0xff] }
 0xac6   :  { %v5142_v47 = vpop.eup %5141 }
 0xac7   :  { %v4331_v11 = vadd.f32 1.0, %v5142_v47  ;;  %v4405_v47 = vld [vmem:[%s6141_s14 + $0x8] sm:$0xff] }
 0xac8   :  { %v5144_v33 = vpop.eup %5143 }
 0xac9   :  { %v4332_v32 = vadd.f32 1.0, %v5144_v33  ;;  %v4335_v52 = vmul.f32 %v4331_v11, %v4319_v41  ;;  %v4420_v11 = vld [vmem:[%s6141_s14 + $0x80] sm:$0xff] }
 0xaca   :  { %v4404_v33 = vld [vmem:[%s6141_s14] sm:$0xff] }
 0xacb   :  { %v4336_v54 = vmul.f32 %v4332_v32, %v4320_v51 }
 0xacd   :  { %v4341_v55 = vadd.f32 %v4336_v54, %v4335_v52 }
 0xacf   :  { %4342 = vadd.xlane.f32.xlu0 %v4341_v55 }
 0xb41   :  { %v4314_v25 = vpop.f32.mrf.mxu0 }
 0xb42   :  { %v4315_v58 = vadd.f32 %v4314_v25, %v4229_v10  ;;  %v4409_v10 = vld [vmem:[%s6141_s14 + $0x28] sm:$0xff] }
 0xb43   :  { %v4316_v44 = vpop.f32.mrf.mxu0  ;;  %4751 = vmatpush3.msra.mxu1 %v4409_v10 }
 0xb44   :  { %v4325_v59 = vmul.f32 0.70710677, %v4315_v58  ;;  %v4317_v60 = vadd.f32 %v4316_v44, %v4233_v19  ;;  %v4321_v0 = vmul.f32 0.5, %v4315_v58  ;;  %v4424_v19 = vld [vmem:[%s6141_s14 + $0xa0] sm:$0xff] }
 0xb45   :  { %4752 = vmatprep.subr.mxu1 %v4424_v19  ;;  %v4339_v44 = vld [vmem:[%s6139_s12] sm:$0x3] }
 0xb46   :  { %5145 = verf.f32 %v4325_v59  ;;  %v4326_v63 = vmul.f32 0.70710677, %v4317_v60  ;;  %v4322_v49 = vmul.f32 0.5, %v4317_v60  ;;  %4753 = vmatpush3.msra.mxu1 %v4408_v31  ;;  %v4340_v59 = vld [vmem:[%s6140_s13] sm:$0x3]  ;;  %v4378_v60 = vrot.slane %v4339_v44, %v5983_v30 }
 0xb47   :  { %4754 = vmatprep.subr.mxu1 %v4423_v38 }
 0xb48   :  { %5147 = verf.f32 %v4326_v63  ;;  %4755 = vmatpush3.msra.mxu1 %v4407_v39  ;;  %v4382_v63 = vrot.slane %v4339_v44, %v5988_v35 }
 0xb49   :  { %4756 = vmatprep.subr.mxu1 %v4422_v42 }
 0xb4a   :  { %4757 = vmatpush3.msra.mxu1 %v4406_v43 }
 0xb4b   :  { %4758 = vmatprep.subr.mxu1 %v4421_v45 }
 0xb4c   :  { %4759 = vmatpush3.msra.mxu1 %v4405_v47 }
 0xb4d   :  { %4760 = vmatprep.subr.mxu1 %v4420_v11 }
 0xb4e   :  { %4761 = vmatpush3.msra.mxu1 %v4404_v33 }
 0xb53   :  { %v5146_v37 = vpop.eup %5145 }
 0xb54   :  { %v4333_v53 = vadd.f32 1.0, %v5146_v37 }
 0xb55   :  { %v5148_v62 = vpop.eup %5147 }
 0xb56   :  { %v4334_v1 = vadd.f32 1.0, %v5148_v62  ;;  %v5998_v3 = vmul.f32 %v4333_v53, %v4321_v0  ;;  %v4393_v62 = vrot.slane %v4340_v59, %v5983_v30  ;;  %v4397_v0 = vrot.slane %v4340_v59, %v5988_v35 }
 0xb58   :  { %v6000_v40 = vmul.f32 %v4334_v1, %v4322_v49  ;;  %v4343_v4 = vpop.xlane.xlu0 %4342 }
 0xb59   :  { %v4348_v5 = vmul.f32 0.00390625, %v4343_v4 }
 0xb5a   :  { %v4344_v13 = vadd.f32 %v6000_v40, %v5998_v3 }
 0xb5b   :  { %v6004_v6 = vsub.f32 %v4335_v52, %v4348_v5  ;;  %v6006_v8 = vsub.f32 %v4336_v54, %v4348_v5 }
 0xb5c   :  { %4345 = vadd.xlane.f32.xlu1 %v4344_v13 }
 0xb5d   :  { %v4354_v9 = vmul.f32 %v6004_v6, %v6004_v6  ;;  %v4355_v14 = vmul.f32 %v6006_v8, %v6006_v8 }
 0xb5f   :  { %v4358_v46 = vadd.f32 %v4355_v14, %v4354_v9 }
 0xb61   :  { %4359 = vadd.xlane.f32.xlu0 %v4358_v46 }
 0xbe5   :  { %v4346_v41 = vpop.xlane.xlu1 %4345 }
 0xbe6   :  { %v4349_v51 = vmul.f32 0.00390625, %v4346_v41 }
 0xbe8   :  { %v4352_v32 = vsub.f32 %v5998_v3, %v4349_v51  ;;  %v4353_v52 = vsub.f32 %v6000_v40, %v4349_v51 }
 0xbea   :  { %v4356_v54 = vmul.f32 %v4352_v32, %v4352_v32  ;;  %v4357_v55 = vmul.f32 %v4353_v52, %v4353_v52  ;;  %v4360_v56 = vpop.xlane.xlu0 %4359 }
 0xbeb   :  { %v4364_v57 = vmul.f32 0.00390625, %v4360_v56 }
 0xbec   :  { %v4361_v25 = vadd.f32 %v4357_v55, %v4356_v54 }
 0xbed   :  { %v4366_v58 = vadd.f32 1e-05, %v4364_v57 }
 0xbee   :  { %4362 = vadd.xlane.f32.xlu1 %v4361_v25 }
 0xbef   :  { %5149 = vrsqrt.f32 %v4366_v58 }
 0xbfc   :  { %v5150_v37 = vpop.eup %5149 }
 0xbfd   :  { %v4371_v53 = vmul.f32 %v5150_v37, %v6006_v8  ;;  %v4370_v49 = vmul.f32 %v5150_v37, %v6004_v6  ;;  %v4613_v6 = vld [vmem:[%s6142_s15] ss:$0 sm:$0xff] }
 0xbff   :  { %v4386_v1 = vmul.f32 %v4382_v63, %v4371_v53  ;;  %v4385_v3 = vmul.f32 %v4378_v60, %v4370_v49 }
 0xc01   :  { %v4401_v40 = vadd.f32 %v4397_v0, %v4386_v1  ;;  %v4400_v4 = vadd.f32 %v4393_v62, %v4385_v3 }
 0xc03   :  { %4507 = vmatprep.mubr.f32.mxu1 %v4401_v40 }
 0xc04   :  { %4508 = vmatmul.mubr.f32.vlgmr.msra.gmra.mxu1 %v4400_v4 }
 0xc77   :  { %v4363_v5 = vpop.xlane.xlu1 %4362 }
 0xc78   :  { %v4365_v13 = vmul.f32 0.00390625, %v4363_v5 }
 0xc7a   :  { %v4367_v9 = vadd.f32 1e-05, %v4365_v13 }
 0xc7c   :  { %5151 = vrsqrt.f32 %v4367_v9 }
 0xc89   :  { %v5152_v14 = vpop.eup %5151 }
 0xc8a   :  { %v4373_v46 = vmul.f32 %v5152_v14, %v4353_v52  ;;  %v4372_v18 = vmul.f32 %v5152_v14, %v4352_v32 }
 0xc8c   :  { %v4388_v8 = vmul.f32 %v4382_v63, %v4373_v46  ;;  %v4387_v15 = vmul.f32 %v4378_v60, %v4372_v18 }
 0xc8e   :  { %v4403_v30 = vadd.f32 %v4397_v0, %v4388_v8  ;;  %v4402_v2 = vadd.f32 %v4393_v62, %v4387_v15 }
 0xc90   :  { %4512 = vmatprep.mubr.f32.mxu1 %v4403_v30 }
 0xc91   :  { %4513 = vmatmul.mubr.f32.gmra.mxu1 %v4402_v2 }
 0xcc4   :  { %v4762_v35 = vpop.f32.mrf.mxu1 }
 0xcc6   :  { %v4763_v61 = vpop.f32.mrf.mxu1 }
 0xcc7   :  { %v4764_v7 = vadd.f32 %v4763_v61, %v4762_v35 }
 0xcc9   :  { %v4510_v12 = vadd.f32 %v4764_v7, %v4613_v6 }
 0xccb   :  { %v4518_v21 = vadd.f32 %v4510_v12, %v5844_v48 }
 0xccd   :  { %4520 = vst.msk [vmem:[#allocation2] sm:$0xff] %vm60_vm0, %v4518_v21 }
 0xd51   :  { %v4765_v50 = vpop.f32.mrf.mxu1 }
 0xd53   :  { %v4766_v24 = vpop.f32.mrf.mxu1 }
 0xd54   :  { %v4767_v16 = vadd.f32 %v4766_v24, %v4765_v50 }
 0xd56   :  { %v4515_v17 = vadd.f32 %v4767_v16, %v4613_v6 }
 0xd58   :  { %v4519_v28 = vadd.f32 %v4515_v17, %v5919_v36 }
 0xd5a   :  { %4521 = vst.msk [vmem:[#allocation2 + $0x8] sm:$0xff] %vm60_vm0, %v4519_v28 }
 0xd5b   :  { %5166 = shalt.err (!%p5163_p4)
}
 0xd5c   :  { %s5195_s15 = smov 128  }
 0xd5d   :  { %4533 = dma.vmem_to_hbm [thread:$0]  %s4528_s23, 256, %s6143_s16, [#allocation3], %s5195_s15, %s5195_s15, %s5191_s29  }
 0xd5e   :  { %5175 = dma.done.wait [#allocation3], 256  }
 0xd5f   :  { %5176 = vsyncadd [#allocation3], 4294967040 }
 0xd60   :  { %4537 = vsyncpa [#allocation3], 1 }

</bundles_post_ra>
